<compile_context>
chip_gen: v5e
topology: v5e:2x2
jax: 0.10.0
libtpu: 0.0.40
codegen_flags: <defaults>
</compile_context>

<pallas_src>
import functools

import jax
import jax.numpy as jnp
from jax.experimental import pallas as pl
from jax.experimental.pallas import tpu as pltpu

Z_DIM = 64
H_DIM = 128
O_DIM = 784
O_PAD = 896          # 7 * 128 — lane-dense padded output width
BN_EPS = 1e-5
SUBLANE = 8


def _gen_block(x, w_ref, b_ref, g_ref, be_ref, mask, inv_n):
    """Linear -> BatchNorm1d (training-mode batch stats) -> ReLU.

    Matmul is bf16 x bf16 -> f32 on the MXU; elementwise math is f32.
    BN is folded into a single FMA: h * scale + shift.
    """
    h = jnp.dot(x.astype(jnp.bfloat16), w_ref[...],
                preferred_element_type=jnp.float32) + b_ref[...]
    if mask is None:
        mu = jnp.mean(h, axis=0, keepdims=True)
        d = h - mu
        var = jnp.mean(d * d, axis=0, keepdims=True)          # biased variance
    else:
        mu = jnp.sum(h * mask, axis=0, keepdims=True) * inv_n
        d = h - mu
        var = jnp.sum(d * d * mask, axis=0, keepdims=True) * inv_n
    scale = g_ref[...] * jax.lax.rsqrt(var + BN_EPS)           # (1, F), EUP rsqrt
    shift = be_ref[...] - mu * scale
    return jnp.maximum(h * scale + shift, 0.0)


def _generator_kernel(z_ref,
                      w1, b1, g1, be1,
                      w2, b2, g2, be2,
                      w3, b3, g3, be3,
                      w4, b4,
                      out_ref, *, valid_b, padded_b):
    if padded_b != valid_b:
        row = jax.lax.broadcasted_iota(jnp.int32, (padded_b, 1), 0)
        mask = (row < valid_b).astype(jnp.float32)
    else:
        mask = None
    inv_n = jnp.float32(1.0 / valid_b)

    x = z_ref[...].astype(jnp.float32)
    x = _gen_block(x, w1, b1, g1, be1, mask, inv_n)            # (B, 128)
    x = _gen_block(x, w2, b2, g2, be2, mask, inv_n)            # (B, 256)
    x = _gen_block(x, w3, b3, g3, be3, mask, inv_n)            # (B, 512)
    y = jnp.dot(x.astype(jnp.bfloat16), w4[...],
                preferred_element_type=jnp.float32) + b4[...]  # (B, 896)
    out_ref[...] = jnp.tanh(y).astype(out_ref.dtype)           # lane-dense store


def generator_forward(noise, kparams):
    """noise: (B, Z_DIM) float32. kparams: output of prepare_params()."""
    B = noise.shape[0]
    b_pad = ((B + SUBLANE - 1) // SUBLANE) * SUBLANE
    if b_pad != B:
        noise = jnp.pad(noise, ((0, b_pad - B), (0, 0)))

    n_inputs = 1 + len(kparams)
    vmem = pl.BlockSpec(memory_space=pltpu.MemorySpace.VMEM)

    # Modest VMEM request: bf16 weights + f32 activations with 2x margin,
    # clamped to [16 MiB, 32 MiB] so it is safe across v5e/v6e/v7x.
    weight_bytes = sum(int(p.size) * p.dtype.itemsize for p in kparams)
    act_bytes = b_pad * (Z_DIM + H_DIM + 2 * H_DIM + 4 * H_DIM + O_PAD) * 4
    vmem_limit = int(min(max(16 << 20, 2 * (weight_bytes + act_bytes)), 32 << 20))

    kernel = functools.partial(_generator_kernel, valid_b=B, padded_b=b_pad)
    out = pl.pallas_call(
        kernel,
        out_shape=jax.ShapeDtypeStruct((b_pad, O_PAD), jnp.float32),
        in_specs=[vmem] * n_inputs,
        out_specs=vmem,
        compiler_params=pltpu.CompilerParams(vmem_limit_bytes=vmem_limit),
    )(noise, *kparams)
    return out[:B, :O_DIM]


def init_params(key):
    """Deterministic f32 params mimicking PyTorch nn.Linear defaults
    (uniform +-1/sqrt(fan_in)); BatchNorm gamma=1, beta=0."""
    dims = [(Z_DIM, H_DIM), (H_DIM, 2 * H_DIM), (2 * H_DIM, 4 * H_DIM),
            (4 * H_DIM, O_DIM)]
    params = []
    for li, (fin, fout) in enumerate(dims):
        key, kw, kb = jax.random.split(key, 3)
        bound = 1.0 / (fin ** 0.5)
        w = jax.random.uniform(kw, (fin, fout), jnp.float32, -bound, bound)
        b = jax.random.uniform(kb, (1, fout), jnp.float32, -bound, bound)
        params.extend([w, b])
        if li < 3:  # genBlock layers have BatchNorm affine params
            params.extend([jnp.ones((1, fout), jnp.float32),
                           jnp.zeros((1, fout), jnp.float32)])
    return params


def prepare_params(params):
    """Kernel-ready params: bf16 weights, f32 biases/gamma/beta, w4/b4 padded
    to the lane-dense 896-wide output."""
    (w1, b1, g1, be1, w2, b2, g2, be2, w3, b3, g3, be3, w4, b4) = params
    w4p = jnp.pad(w4, ((0, 0), (0, O_PAD - O_DIM)))
    b4p = jnp.pad(b4, ((0, 0), (0, O_PAD - O_DIM)))
    bf16 = lambda w: w.astype(jnp.bfloat16)
    return [bf16(w1), b1, g1, be1,
            bf16(w2), b2, g2, be2,
            bf16(w3), b3, g3, be3,
            bf16(w4p), b4p]


def reference_forward(noise, params):
    """Pure-JAX reference mirroring the kernel's mixed precision
    (bf16 matmul inputs, f32 accumulation and elementwise math)."""
    (w1, b1, g1, be1, w2, b2, g2, be2, w3, b3, g3, be3, w4, b4) = params

    def mm(x, w):
        return jnp.dot(x.astype(jnp.bfloat16), w.astype(jnp.bfloat16),
                       preferred_element_type=jnp.float32)

    x = noise
    for (w, b, g, be) in [(w1, b1, g1, be1), (w2, b2, g2, be2),
                          (w3, b3, g3, be3)]:
        h = mm(x, w) + b
        mu = jnp.mean(h, axis=0, keepdims=True)
        var = jnp.mean((h - mu) ** 2, axis=0, keepdims=True)
        scale = g * jax.lax.rsqrt(var + BN_EPS)
        x = jnp.maximum(h * scale + (be - mu * scale), 0.0)
    return jnp.tanh(mm(x, w4) + b4)


if __name__ == "__main__":
    key = jax.random.PRNGKey(0)
    key, knoise = jax.random.split(key)
    B = 8
    noise = jax.random.normal(knoise, (B, Z_DIM), jnp.float32)
    params = init_params(key)
    kparams = prepare_params(params)

    out = generator_forward(noise, kparams)
    out = jax.block_until_ready(out)

    ref = reference_forward(noise, params)
    assert out.shape == (B, O_DIM), out.shape
    max_err = float(jnp.max(jnp.abs(out - ref)))
    assert max_err < 2e-3, max_err

    print("KERNEL_OK")
</pallas_src>

<mosaic_0001>
module attributes {stable_mosaic.version = 11 : i64} {
  func.func @_generator_kernel(%arg0: memref<8x64xf32, #tpu.memory_space<vmem>>, %arg1: memref<64x128xbf16, #tpu.memory_space<vmem>>, %arg2: memref<1x128xf32, #tpu.memory_space<vmem>>, %arg3: memref<1x128xf32, #tpu.memory_space<vmem>>, %arg4: memref<1x128xf32, #tpu.memory_space<vmem>>, %arg5: memref<128x256xbf16, #tpu.memory_space<vmem>>, %arg6: memref<1x256xf32, #tpu.memory_space<vmem>>, %arg7: memref<1x256xf32, #tpu.memory_space<vmem>>, %arg8: memref<1x256xf32, #tpu.memory_space<vmem>>, %arg9: memref<256x512xbf16, #tpu.memory_space<vmem>>, %arg10: memref<1x512xf32, #tpu.memory_space<vmem>>, %arg11: memref<1x512xf32, #tpu.memory_space<vmem>>, %arg12: memref<1x512xf32, #tpu.memory_space<vmem>>, %arg13: memref<512x896xbf16, #tpu.memory_space<vmem>>, %arg14: memref<1x896xf32, #tpu.memory_space<vmem>>, %arg15: memref<8x896xf32, #tpu.memory_space<vmem>>) attributes {dimension_semantics = [], scalar_prefetch = 0 : i64, scratch_operands = 0 : i64, tpu.core_type = #tpu.core_type<tc>} {
    %c0 = arith.constant 0 : index
    %c0_0 = arith.constant 0 : index
    %0 = vector.load %arg0[%c0, %c0_0] : memref<8x64xf32, #tpu.memory_space<vmem>>, vector<8x64xf32>
    %1 = arith.truncf %0 : vector<8x64xf32> to vector<8x64xbf16>
    %c0_1 = arith.constant 0 : index
    %c0_2 = arith.constant 0 : index
    %2 = vector.load %arg1[%c0_1, %c0_2] : memref<64x128xbf16, #tpu.memory_space<vmem>>, vector<64x128xbf16>
    %cst = arith.constant dense<0.000000e+00> : vector<8x128xf32>
    %3 = tpu.matmul %1, %2, %cst {dimension_numbers = #tpu.dot_dimension_numbers<[1], [0], [0], [1], [0, 0, 1, 1], [], []>} : vector<8x64xbf16>, vector<64x128xbf16>, vector<8x128xf32> -> vector<8x128xf32>
    %c0_3 = arith.constant 0 : index
    %c0_4 = arith.constant 0 : index
    %4 = vector.load %arg2[%c0_3, %c0_4] : memref<1x128xf32, #tpu.memory_space<vmem>>, vector<1x128xf32>
    %5 = vector.broadcast %4 : vector<1x128xf32> to vector<8x128xf32>
    %6 = arith.addf %3, %5 : vector<8x128xf32>
    %cst_5 = arith.constant dense<0.000000e+00> : vector<128xf32>
    %7 = vector.multi_reduction <add>, %6, %cst_5 [0] : vector<8x128xf32> to vector<128xf32>
    %8 = vector.shape_cast %7 : vector<128xf32> to vector<1x128xf32>
    %cst_6 = arith.constant 8.000000e+00 : f32
    %9 = vector.broadcast %cst_6 : f32 to vector<1x128xf32>
    %10 = arith.divf %8, %9 : vector<1x128xf32>
    %11 = vector.broadcast %10 : vector<1x128xf32> to vector<8x128xf32>
    %12 = arith.subf %6, %11 : vector<8x128xf32>
    %13 = arith.mulf %12, %12 : vector<8x128xf32>
    %cst_7 = arith.constant dense<0.000000e+00> : vector<128xf32>
    %14 = vector.multi_reduction <add>, %13, %cst_7 [0] : vector<8x128xf32> to vector<128xf32>
    %15 = vector.shape_cast %14 : vector<128xf32> to vector<1x128xf32>
    %cst_8 = arith.constant 8.000000e+00 : f32
    %16 = vector.broadcast %cst_8 : f32 to vector<1x128xf32>
    %17 = arith.divf %15, %16 : vector<1x128xf32>
    %c0_9 = arith.constant 0 : index
    %c0_10 = arith.constant 0 : index
    %18 = vector.load %arg3[%c0_9, %c0_10] : memref<1x128xf32, #tpu.memory_space<vmem>>, vector<1x128xf32>
    %cst_11 = arith.constant 9.99999974E-6 : f32
    %19 = vector.broadcast %cst_11 : f32 to vector<1x128xf32>
    %20 = arith.addf %17, %19 : vector<1x128xf32>
    %21 = math.rsqrt %20 : vector<1x128xf32>
    %22 = arith.mulf %18, %21 : vector<1x128xf32>
    %c0_12 = arith.constant 0 : index
    %c0_13 = arith.constant 0 : index
    %23 = vector.load %arg4[%c0_12, %c0_13] : memref<1x128xf32, #tpu.memory_space<vmem>>, vector<1x128xf32>
    %24 = arith.mulf %10, %22 : vector<1x128xf32>
    %25 = arith.subf %23, %24 : vector<1x128xf32>
    %26 = vector.broadcast %22 : vector<1x128xf32> to vector<8x128xf32>
    %27 = arith.mulf %6, %26 : vector<8x128xf32>
    %28 = vector.broadcast %25 : vector<1x128xf32> to vector<8x128xf32>
    %29 = arith.addf %27, %28 : vector<8x128xf32>
    %cst_14 = arith.constant 0.000000e+00 : f32
    %30 = vector.broadcast %cst_14 : f32 to vector<8x128xf32>
    %31 = arith.maximumf %29, %30 : vector<8x128xf32>
    %32 = arith.truncf %31 : vector<8x128xf32> to vector<8x128xbf16>
    %c0_15 = arith.constant 0 : index
    %c0_16 = arith.constant 0 : index
    %33 = vector.load %arg5[%c0_15, %c0_16] : memref<128x256xbf16, #tpu.memory_space<vmem>>, vector<128x256xbf16>
    %cst_17 = arith.constant dense<0.000000e+00> : vector<8x256xf32>
    %34 = tpu.matmul %32, %33, %cst_17 {dimension_numbers = #tpu.dot_dimension_numbers<[1], [0], [0], [1], [0, 0, 1, 1], [], []>} : vector<8x128xbf16>, vector<128x256xbf16>, vector<8x256xf32> -> vector<8x256xf32>
    %c0_18 = arith.constant 0 : index
    %c0_19 = arith.constant 0 : index
    %35 = vector.load %arg6[%c0_18, %c0_19] : memref<1x256xf32, #tpu.memory_space<vmem>>, vector<1x256xf32>
    %36 = vector.broadcast %35 : vector<1x256xf32> to vector<8x256xf32>
    %37 = arith.addf %34, %36 : vector<8x256xf32>
    %cst_20 = arith.constant dense<0.000000e+00> : vector<256xf32>
    %38 = vector.multi_reduction <add>, %37, %cst_20 [0] : vector<8x256xf32> to vector<256xf32>
    %39 = vector.shape_cast %38 : vector<256xf32> to vector<1x256xf32>
    %cst_21 = arith.constant 8.000000e+00 : f32
    %40 = vector.broadcast %cst_21 : f32 to vector<1x256xf32>
    %41 = arith.divf %39, %40 : vector<1x256xf32>
    %42 = vector.broadcast %41 : vector<1x256xf32> to vector<8x256xf32>
    %43 = arith.subf %37, %42 : vector<8x256xf32>
    %44 = arith.mulf %43, %43 : vector<8x256xf32>
    %cst_22 = arith.constant dense<0.000000e+00> : vector<256xf32>
    %45 = vector.multi_reduction <add>, %44, %cst_22 [0] : vector<8x256xf32> to vector<256xf32>
    %46 = vector.shape_cast %45 : vector<256xf32> to vector<1x256xf32>
    %cst_23 = arith.constant 8.000000e+00 : f32
    %47 = vector.broadcast %cst_23 : f32 to vector<1x256xf32>
    %48 = arith.divf %46, %47 : vector<1x256xf32>
    %c0_24 = arith.constant 0 : index
    %c0_25 = arith.constant 0 : index
    %49 = vector.load %arg7[%c0_24, %c0_25] : memref<1x256xf32, #tpu.memory_space<vmem>>, vector<1x256xf32>
    %cst_26 = arith.constant 9.99999974E-6 : f32
    %50 = vector.broadcast %cst_26 : f32 to vector<1x256xf32>
    %51 = arith.addf %48, %50 : vector<1x256xf32>
    %52 = math.rsqrt %51 : vector<1x256xf32>
    %53 = arith.mulf %49, %52 : vector<1x256xf32>
    %c0_27 = arith.constant 0 : index
    %c0_28 = arith.constant 0 : index
    %54 = vector.load %arg8[%c0_27, %c0_28] : memref<1x256xf32, #tpu.memory_space<vmem>>, vector<1x256xf32>
    %55 = arith.mulf %41, %53 : vector<1x256xf32>
    %56 = arith.subf %54, %55 : vector<1x256xf32>
    %57 = vector.broadcast %53 : vector<1x256xf32> to vector<8x256xf32>
    %58 = arith.mulf %37, %57 : vector<8x256xf32>
    %59 = vector.broadcast %56 : vector<1x256xf32> to vector<8x256xf32>
    %60 = arith.addf %58, %59 : vector<8x256xf32>
    %cst_29 = arith.constant 0.000000e+00 : f32
    %61 = vector.broadcast %cst_29 : f32 to vector<8x256xf32>
    %62 = arith.maximumf %60, %61 : vector<8x256xf32>
    %63 = arith.truncf %62 : vector<8x256xf32> to vector<8x256xbf16>
    %c0_30 = arith.constant 0 : index
    %c0_31 = arith.constant 0 : index
    %64 = vector.load %arg9[%c0_30, %c0_31] : memref<256x512xbf16, #tpu.memory_space<vmem>>, vector<256x512xbf16>
    %cst_32 = arith.constant dense<0.000000e+00> : vector<8x512xf32>
    %65 = tpu.matmul %63, %64, %cst_32 {dimension_numbers = #tpu.dot_dimension_numbers<[1], [0], [0], [1], [0, 0, 1, 1], [], []>} : vector<8x256xbf16>, vector<256x512xbf16>, vector<8x512xf32> -> vector<8x512xf32>
    %c0_33 = arith.constant 0 : index
    %c0_34 = arith.constant 0 : index
    %66 = vector.load %arg10[%c0_33, %c0_34] : memref<1x512xf32, #tpu.memory_space<vmem>>, vector<1x512xf32>
    %67 = vector.broadcast %66 : vector<1x512xf32> to vector<8x512xf32>
    %68 = arith.addf %65, %67 : vector<8x512xf32>
    %cst_35 = arith.constant dense<0.000000e+00> : vector<512xf32>
    %69 = vector.multi_reduction <add>, %68, %cst_35 [0] : vector<8x512xf32> to vector<512xf32>
    %70 = vector.shape_cast %69 : vector<512xf32> to vector<1x512xf32>
    %cst_36 = arith.constant 8.000000e+00 : f32
    %71 = vector.broadcast %cst_36 : f32 to vector<1x512xf32>
    %72 = arith.divf %70, %71 : vector<1x512xf32>
    %73 = vector.broadcast %72 : vector<1x512xf32> to vector<8x512xf32>
    %74 = arith.subf %68, %73 : vector<8x512xf32>
    %75 = arith.mulf %74, %74 : vector<8x512xf32>
    %cst_37 = arith.constant dense<0.000000e+00> : vector<512xf32>
    %76 = vector.multi_reduction <add>, %75, %cst_37 [0] : vector<8x512xf32> to vector<512xf32>
    %77 = vector.shape_cast %76 : vector<512xf32> to vector<1x512xf32>
    %cst_38 = arith.constant 8.000000e+00 : f32
    %78 = vector.broadcast %cst_38 : f32 to vector<1x512xf32>
    %79 = arith.divf %77, %78 : vector<1x512xf32>
    %c0_39 = arith.constant 0 : index
    %c0_40 = arith.constant 0 : index
    %80 = vector.load %arg11[%c0_39, %c0_40] : memref<1x512xf32, #tpu.memory_space<vmem>>, vector<1x512xf32>
    %cst_41 = arith.constant 9.99999974E-6 : f32
    %81 = vector.broadcast %cst_41 : f32 to vector<1x512xf32>
    %82 = arith.addf %79, %81 : vector<1x512xf32>
    %83 = math.rsqrt %82 : vector<1x512xf32>
    %84 = arith.mulf %80, %83 : vector<1x512xf32>
    %c0_42 = arith.constant 0 : index
    %c0_43 = arith.constant 0 : index
    %85 = vector.load %arg12[%c0_42, %c0_43] : memref<1x512xf32, #tpu.memory_space<vmem>>, vector<1x512xf32>
    %86 = arith.mulf %72, %84 : vector<1x512xf32>
    %87 = arith.subf %85, %86 : vector<1x512xf32>
    %88 = vector.broadcast %84 : vector<1x512xf32> to vector<8x512xf32>
    %89 = arith.mulf %68, %88 : vector<8x512xf32>
    %90 = vector.broadcast %87 : vector<1x512xf32> to vector<8x512xf32>
    %91 = arith.addf %89, %90 : vector<8x512xf32>
    %cst_44 = arith.constant 0.000000e+00 : f32
    %92 = vector.broadcast %cst_44 : f32 to vector<8x512xf32>
    %93 = arith.maximumf %91, %92 : vector<8x512xf32>
    %94 = arith.truncf %93 : vector<8x512xf32> to vector<8x512xbf16>
    %c0_45 = arith.constant 0 : index
    %c0_46 = arith.constant 0 : index
    %95 = vector.load %arg13[%c0_45, %c0_46] : memref<512x896xbf16, #tpu.memory_space<vmem>>, vector<512x896xbf16>
    %cst_47 = arith.constant dense<0.000000e+00> : vector<8x896xf32>
    %96 = tpu.matmul %94, %95, %cst_47 {dimension_numbers = #tpu.dot_dimension_numbers<[1], [0], [0], [1], [0, 0, 1, 1], [], []>} : vector<8x512xbf16>, vector<512x896xbf16>, vector<8x896xf32> -> vector<8x896xf32>
    %c0_48 = arith.constant 0 : index
    %c0_49 = arith.constant 0 : index
    %97 = vector.load %arg14[%c0_48, %c0_49] : memref<1x896xf32, #tpu.memory_space<vmem>>, vector<1x896xf32>
    %98 = vector.broadcast %97 : vector<1x896xf32> to vector<8x896xf32>
    %99 = arith.addf %96, %98 : vector<8x896xf32>
    %100 = math.tanh %99 : vector<8x896xf32>
    %c0_50 = arith.constant 0 : index
    %c0_51 = arith.constant 0 : index
    %101 = vector.load %arg15[%c0_50, %c0_51] : memref<8x896xf32, #tpu.memory_space<vmem>>, vector<8x896xf32>
    tpu.vector_store %arg15[%c0_50, %c0_51], %100 {strides = array<i32>} : memref<8x896xf32, #tpu.memory_space<vmem>>, vector<8x896xf32>,
    return
  }
}

</mosaic_0001>

<bundles_post_ra>
// kernel: tpu_custom_call.1
= control target key start
LH: loop header
LB: loop body
LE: loop exit
PB: predicated region body
PF: predicated region fallthrough
CT: control target
= control target key end

     0   :  { %20 = vsyncpa [#allocation3], 0  ;;  %s5345_s0 = inlined_call_operand.hbm [shape: f32[8,64], index: 0, kind: input, shape index: {}]   ;;  %s5346_s1 = inlined_call_operand.hbm [shape: bf16[64,128], index: 1, kind: input, shape index: {}]   ;;  %s5347_s2 = inlined_call_operand.hbm [shape: f32[1,128], index: 2, kind: input, shape index: {}]   ;;  %s5348_s3 = inlined_call_operand.hbm [shape: f32[1,128], index: 3, kind: input, shape index: {}]   ;;  %s5349_s4 = inlined_call_operand.hbm [shape: f32[1,128], index: 4, kind: input, shape index: {}]   ;;  %s5350_s5 = inlined_call_operand.hbm [shape: bf16[128,256], index: 5, kind: input, shape index: {}]   ;;  %s5351_s6 = inlined_call_operand.vmem [shape: f32[1,256], index: 6, kind: input, shape index: {}]   ;;  %s5352_s7 = inlined_call_operand.hbm [shape: f32[1,256], index: 7, kind: input, shape index: {}]   ;;  %s5353_s8 = inlined_call_operand.hbm [shape: f32[1,256], index: 8, kind: input, shape index: {}]   ;;  %s5354_s9 = inlined_call_operand.hbm [shape: bf16[256,512], index: 9, kind: input, shape index: {}]   ;;  %s5355_s10 = inlined_call_operand.vmem [shape: f32[1,512], index: 10, kind: input, shape index: {}]   ;;  %s5356_s11 = inlined_call_operand.hbm [shape: f32[1,512], index: 11, kind: input, shape index: {}]   ;;  %s5357_s12 = inlined_call_operand.hbm [shape: f32[1,512], index: 12, kind: input, shape index: {}]   ;;  %s5358_s13 = inlined_call_operand.hbm [shape: bf16[512,896], index: 13, kind: input, shape index: {}]   ;;  %s5359_s14 = inlined_call_operand.vmem [shape: f32[1,896], index: 14, kind: input, shape index: {}]   ;;  %s5360_s15 = inlined_call_operand.hbm [shape: f32[8,896], index: 15, kind: output, shape index: {}]  }
   0x1   :  { %21 = vsyncpa [#allocation6], 0 }
   0x2   :  { %22 = vsyncpa [#allocation9], 0 }
   0x3   :  { %23 = vsyncpa [#allocation12], 0 }
   0x4   :  { %24 = vsyncpa [#allocation15], 0 }
   0x5   :  { %25 = vsyncpa [#allocation18], 0 }
   0x6   :  { %26 = vsyncpa [#allocation21], 0  ;;  %s43_s20 = sshll.u32 %s5346_s1, 4  ;;  %s44_s20 = int_to_ptr.hbm [resolvable:$true] %s43_s20 }
   0x7   :  { %27 = vsyncpa [#allocation4], 0  ;;  %s4963_s21 = smov [#allocation5]   ;;  %s68_s25 = sshll.u32 %s5348_s3, 4  ;;  %s69_s25 = int_to_ptr.hbm [resolvable:$true] %s68_s25 }
   0x8   :  { %s45_s22 = sshll.u32 %s4963_s21, 4  ;;  %s4964_s26 = smov 64   ;;  %s46_s22 = int_to_ptr.vmem [resolvable:$true] %s45_s22 }
   0x9   :  { %s4965_s27 = smov 4   ;;  %s4966_s28 = smov [#allocation8]  }
   0xa   :  { %51 = dma.hbm_to_vmem [thread:$0]  %s44_s20, 512, %s46_s22, [#allocation6], %s4964_s26, %s4964_s26, %s4965_s27  }
   0xb   :  { %s70_s29 = sshll.u32 %s4966_s28, 4  ;;  %s89_s17 = sshll.u32 %s5350_s5, 4  ;;  %s71_s29 = int_to_ptr.vmem [resolvable:$true] %s70_s29  ;;  %s90_s17 = int_to_ptr.hbm [resolvable:$true] %s89_s17 }
   0xc   :  { %73 = dma.hbm_to_vmem [thread:$0]  %s69_s25, 16, %s71_s29, [#allocation9]  }
   0xd   :  { %s4967_s1 = smov [#allocation11]   ;;  %s116_s3 = sshll.u32 %s5353_s8, 4  ;;  %s117_s3 = int_to_ptr.hbm [resolvable:$true] %s116_s3 }
   0xe   :  { %s91_s18 = sshll.u32 %s4967_s1, 4  ;;  %s4968_s23 = smov 128   ;;  %s92_s18 = int_to_ptr.vmem [resolvable:$true] %s91_s18 }
   0xf   :  { %s4969_s24 = smov 8   ;;  %s4970_s20 = smov [#allocation14]  }
  0x10   :  { %97 = dma.hbm_to_vmem [thread:$0]  %s90_s17, 2048, %s92_s18, [#allocation12], %s4968_s23, %s4968_s23, %s4969_s24  }
  0x11   :  { %s118_s22 = sshll.u32 %s4970_s20, 4  ;;  %s142_s5 = sshll.u32 %s5356_s11, 4  ;;  %s119_s22 = int_to_ptr.vmem [resolvable:$true] %s118_s22  ;;  %s143_s5 = int_to_ptr.hbm [resolvable:$true] %s142_s5 }
  0x12   :  { %121 = dma.hbm_to_vmem [thread:$0]  %s117_s3, 32, %s119_s22, [#allocation15]  }
  0x13   :  { %s33_s29 = sshll.u32 %s5345_s0, 4  ;;  %s4971_s30 = smov [#allocation17]   ;;  %s34_s29 = int_to_ptr.hbm [resolvable:$true] %s33_s29 }
  0x14   :  { %s144_s16 = sshll.u32 %s4971_s30, 4  ;;  %s4972_s8 = smov [#allocation2]   ;;  %s145_s16 = int_to_ptr.vmem [resolvable:$true] %s144_s16 }
  0x15   :  { %147 = dma.hbm_to_vmem [thread:$0]  %s143_s5, 64, %s145_s16, [#allocation18]  }
  0x16   :  { %s35_s17 = sshll.u32 %s4972_s8, 4  ;;  %s57_s19 = sshll.u32 %s5347_s2, 4  ;;  %s36_s17 = int_to_ptr.vmem [resolvable:$true] %s35_s17  ;;  %s58_s19 = int_to_ptr.hbm [resolvable:$true] %s57_s19 }
  0x17   :  { %38 = dma.hbm_to_vmem [thread:$0]  %s34_s29, 128, %s36_s17, [#allocation3]  }
  0x18   :  { %s79_s3 = sshll.u32 %s5349_s4, 4  ;;  %s4973_s23 = smov [#allocation7]   ;;  %s80_s3 = int_to_ptr.hbm [resolvable:$true] %s79_s3 }
  0x19   :  { %s59_s0 = sshll.u32 %s4973_s23, 4  ;;  %s4974_s24 = smov [#allocation10]   ;;  %s60_s0 = int_to_ptr.vmem [resolvable:$true] %s59_s0 }
  0x1a   :  { %62 = dma.hbm_to_vmem [thread:$0]  %s58_s19, 16, %s60_s0, [#allocation6]  }
  0x1b   :  { %s81_s20 = sshll.u32 %s4974_s24, 4  ;;  %s105_s27 = sshll.u32 %s5352_s7, 4  ;;  %s82_s20 = int_to_ptr.vmem [resolvable:$true] %s81_s20  ;;  %s106_s27 = int_to_ptr.hbm [resolvable:$true] %s105_s27 }
  0x1c   :  { %84 = dma.hbm_to_vmem [thread:$0]  %s80_s3, 16, %s82_s20, [#allocation9]  }
  0x1d   :  { %s126_s25 = sshll.u32 %s5354_s9, 4  ;;  %s4975_s28 = smov [#allocation13]   ;;  %s127_s25 = int_to_ptr.hbm [resolvable:$true] %s126_s25 }
  0x1e   :  { %s107_s4 = sshll.u32 %s4975_s28, 4  ;;  %s4976_s29 = smov [#allocation16]   ;;  %s108_s4 = int_to_ptr.vmem [resolvable:$true] %s107_s4 }
  0x1f   :  { %110 = dma.hbm_to_vmem [thread:$0]  %s106_s27, 32, %s108_s4, [#allocation12]  }
  0x20   :  { %s128_s30 = sshll.u32 %s4976_s29, 4  ;;  %s4977_s16 = smov 256   ;;  %s129_s30 = int_to_ptr.vmem [resolvable:$true] %s128_s30 }
  0x21   :  { %s4978_s8 = smov 16   ;;  %s153_s1 = sshll.u32 %s5357_s12, 4  ;;  %s154_s1 = int_to_ptr.hbm [resolvable:$true] %s153_s1 }
  0x22   :  { %134 = dma.hbm_to_vmem [thread:$0]  %s127_s25, 8192, %s129_s30, [#allocation15], %s4977_s16, %s4977_s16, %s4978_s8  }
  0x23   :  { %s4979_s18 = smov [#allocation19]   ;;  %s163_s21 = sshll.u32 %s5358_s13, 4  ;;  %s164_s21 = int_to_ptr.hbm [resolvable:$true] %s163_s21 }
  0x24   :  { %s155_s19 = sshll.u32 %s4979_s18, 4  ;;  %s4980_s3 = smov [#allocation20]   ;;  %s156_s19 = int_to_ptr.vmem [resolvable:$true] %s155_s19 }
  0x25   :  { %158 = dma.hbm_to_vmem [thread:$0]  %s154_s1, 64, %s156_s19, [#allocation18]  }
  0x26   :  { %s165_s23 = sshll.u32 %s4980_s3, 4  ;;  %s4981_s0 = smov 448   ;;  %s166_s23 = int_to_ptr.vmem [resolvable:$true] %s165_s23 }
  0x27   :  { %s4982_s24 = smov 28  }
  0x28   :  { %171 = dma.hbm_to_vmem [thread:$0]  %s164_s21, 28672, %s166_s23, [#allocation21], %s4981_s0, %s4981_s0, %s4982_s24  }
  0x29   :  { %4947 = dma.done.wait [#allocation3], 128  }
  0x2a   :  { %4948 = vsyncadd [#allocation3], 4294967168 }
  0x2b   :  { %4949 = dma.done.wait [#allocation6], 528  }
  0x2c   :  { %4950 = vsyncadd [#allocation6], 4294966768 }
  0x2d   :  { %4951 = dma.done.wait [#allocation9], 32  }
  0x2e   :  { %4952 = vsyncadd [#allocation9], 4294967264 }
  0x2f   :  { %4953 = dma.done.wait [#allocation12], 2080  }
  0x30   :  { %4954 = vsyncadd [#allocation12], 4294965216 }
  0x31   :  { %4955 = dma.done.wait [#allocation15], 8224  }
  0x32   :  { %4956 = vsyncadd [#allocation15], 4294959072 }
  0x33   :  { %4957 = dma.done.wait [#allocation18], 128  }
  0x34   :  { %4958 = vsyncadd [#allocation18], 4294967168 }
  0x35   :  { %4959 = dma.done.wait [#allocation21], 28672  }
  0x36   :  { %4960 = vsyncadd [#allocation21], 4294938624  ;;  %v4277_v0 = vld [vmem:[#allocation5 + $0x18] sm:$0xff]  ;;  %v4276_v1 = vld [vmem:[#allocation5 + $0x10] sm:$0xff]  ;;  %vm261_vm0 = vcmask 523264   ;;  %v4983_v6 = vmov 8.0  }
  0x37   :  { %269 = vmatpush.bf16.msra.mxu0 %v4277_v0  ;;  %v4275_v2 = vld [vmem:[#allocation5 + $0x8] sm:$0xff]  ;;  %v4274_v3 = vld [vmem:[#allocation5] sm:$0xff]  ;;  %v223_v4 = vld [vmem:[#allocation2] sm:$0xff]  ;;  %4605 = vrcp.f32 %v4983_v6  ;;  %vm513_vm8 = vcmask 1040384   ;;  %s3025_s5 = sshll.u32 %s5360_s15, 4  ;;  %s3026_s5 = int_to_ptr.hbm [resolvable:$true] %s3025_s5 }
  0x38   :  { %v224_v5 = vpack.c.bf16 %v223_v4, %v223_v4  ;;  %v4604_v9 = vld [vmem:[#allocation7] ss:$0 sm:$0xff]  ;;  %v3116_v13 = vld [vmem:[#allocation11 + $0x70] sm:$0xf]  ;;  %v4292_v15 = vld [vmem:[#allocation11 + $0x74] sm:$0xf] }
  0x39   :  { %v4293_v14 = vld [vmem:[#allocation11 + $0x74] sm:$0xf0]  ;;  %v3118_v17 = vld [vmem:[#allocation11 + $0x78] sm:$0xf0]  ;;  %v3108_v18 = vld [vmem:[#allocation11 + $0x60] sm:$0xf] }
  0x3a   :  { %v3117_v16 = vor.u32 %v4293_v14, %v3116_v13  ;;  %v4291_v19 = vld [vmem:[#allocation11 + $0x64] sm:$0xf0]  ;;  %v3121_v21 = vor.u32 %v4292_v15, %v3118_v17  ;;  %v4290_v22 = vld [vmem:[#allocation11 + $0x64] sm:$0xf]  ;;  %v3110_v23 = vld [vmem:[#allocation11 + $0x68] sm:$0xf0] }
  0x3b   :  { %270 = vmatpush.bf16.msra.mxu0 %v4276_v1  ;;  %v3109_v25 = vor.u32 %v4291_v19, %v3108_v18  ;;  %v3113_v27 = vor.u32 %v4290_v22, %v3110_v23  ;;  %v3100_v28 = vld [vmem:[#allocation11 + $0x50] sm:$0xf]  ;;  %v4289_v29 = vld [vmem:[#allocation11 + $0x54] sm:$0xf0]  ;;  %v4288_v30 = vld [vmem:[#allocation11 + $0x54] sm:$0xf] }
  0x3c   :  { %429 = vmatpush.bf16.msra.mxu1 %v3117_v16  ;;  %442 = vmatpush.bf16.msra.mxu2 %v3121_v21  ;;  %v3102_v31 = vld [vmem:[#allocation11 + $0x58] sm:$0xf0]  ;;  %v3101_v35 = vor.u32 %v4289_v29, %v3100_v28  ;;  %v3092_v38 = vld [vmem:[#allocation11 + $0x40] sm:$0xf]  ;;  %v4287_v39 = vld [vmem:[#allocation11 + $0x44] sm:$0xf0] }
  0x3d   :  { %v4606_v7 = vpop.eup %4605  ;;  %v3105_v37 = vor.u32 %v4288_v30, %v3102_v31  ;;  %v4286_v40 = vld [vmem:[#allocation11 + $0x44] sm:$0xf]  ;;  %v3094_v41 = vld [vmem:[#allocation11 + $0x48] sm:$0xf0]  ;;  %v3093_v44 = vor.u32 %v4287_v39, %v3092_v38  ;;  %v3084_v47 = vld [vmem:[#allocation11 + $0x30] sm:$0xf] }
  0x3e   :  { %v285_v8 = vmul.f32 8.0, %v4606_v7  ;;  %vm289_vm1 = vweird.f32 %v4606_v7  ;;  %v3097_v46 = vor.u32 %v4286_v40, %v3094_v41  ;;  %v4285_v48 = vld [vmem:[#allocation11 + $0x34] sm:$0xf0]  ;;  %v4284_v49 = vld [vmem:[#allocation11 + $0x34] sm:$0xf] }
  0x3f   :  { %271 = vmatpush.bf16.msra.mxu0 %v4275_v2  ;;  %v3086_v50 = vld [vmem:[#allocation11 + $0x38] sm:$0xf0]  ;;  %v3085_v52 = vor.u32 %v4285_v48, %v3084_v47  ;;  %v3076_v55 = vld [vmem:[#allocation11 + $0x20] sm:$0xf]  ;;  %v4283_v56 = vld [vmem:[#allocation11 + $0x24] sm:$0xf0] }
  0x40   :  { %v286_v11 = vsub.f32 1.0, %v285_v8  ;;  %430 = vmatpush.bf16.msra.mxu1 %v3109_v25  ;;  %443 = vmatpush.bf16.msra.mxu2 %v3113_v27  ;;  %v3089_v54 = vor.u32 %v4284_v49, %v3086_v50  ;;  %v4282_v57 = vld [vmem:[#allocation11 + $0x24] sm:$0xf]  ;;  %v3078_v58 = vld [vmem:[#allocation11 + $0x28] sm:$0xf0]  ;;  %v3077_v60 = vor.u32 %v4283_v56, %v3076_v55 }
  0x41   :  { %v3081_v62 = vor.u32 %v4282_v57, %v3078_v58  ;;  %v3068_v63 = vld [vmem:[#allocation11 + $0x10] sm:$0xf]  ;;  %v4281_v0 = vld [vmem:[#allocation11 + $0x14] sm:$0xf0]  ;;  %v4280_v1 = vld [vmem:[#allocation11 + $0x14] sm:$0xf] }
  0x42   :  { %v287_v24 = vmul.f32 %v4606_v7, %v286_v11  ;;  %v3070_v2 = vld [vmem:[#allocation11 + $0x18] sm:$0xf0]  ;;  %v3069_v4 = vor.u32 %v4281_v0, %v3068_v63  ;;  %v4279_v8 = vld [vmem:[#allocation11 + $0x4] sm:$0xf0]  ;;  %v4356_v48 = vld [vmem:[#allocation16 + $0x1ec] sm:$0xf0] }
  0x43   :  { %272 = vmatpush.bf16.msra.mxu0 %v4274_v3  ;;  %v3073_v6 = vor.u32 %v4280_v1, %v3070_v2  ;;  %v314_v28 = vld [vmem:[#allocation10] sm:$0x1]  ;;  %v4322_v49 = vld [vmem:[#allocation16 + $0xe4] sm:$0xf]  ;;  %v3238_v50 = vld [vmem:[#allocation16 + $0xf0] sm:$0xf0] }
  0x44   :  { %v288_v33 = vadd.f32 %v4606_v7, %v287_v24  ;;  %431 = vmatpush.bf16.msra.mxu1 %v3101_v35  ;;  %444 = vmatpush.bf16.msra.mxu2 %v3105_v37  ;;  %v301_v24 = vld [vmem:[#allocation8] sm:$0x1]  ;;  %v343_v37 = vld [vmem:[%s5351_s6] sm:$0x3]  ;;  %v3366_v55 = vld [vmem:[#allocation16 + $0x1f0] sm:$0xf0] }
  0x45   :  { %v345_v38 = vperm.slane %v343_v37, 0  ;;  %v4352_v2 = vld [vmem:[#allocation16 + $0x1cc] sm:$0xf0] }
  0x46   :  { %3057 = vmatmul.msk.bf16.vlgmr.msra.gmra.mxu0 %vm261_vm0, %v224_v5  ;;  %v5105_v43 = vsel %vm289_vm1, %v4606_v7, %v288_v33  ;;  %v3060_v7 = vld [vmem:[#allocation11] sm:$0xf] }
  0x47   :  { %v3061_v13 = vor.u32 %v4279_v8, %v3060_v7  ;;  %v3350_v7 = vld [vmem:[#allocation16 + $0x1d0] sm:$0xf0] }
  0x48   :  { %432 = vmatpush.bf16.msra.mxu1 %v3093_v44  ;;  %445 = vmatpush.bf16.msra.mxu2 %v3097_v46  ;;  %v3236_v44 = vld [vmem:[#allocation16 + $0xe0] sm:$0xf] }
  0x4c   :  { %433 = vmatpush.bf16.msra.mxu1 %v3085_v52  ;;  %446 = vmatpush.bf16.msra.mxu2 %v3089_v54  ;;  %v4354_v54 = vld [vmem:[#allocation16 + $0x1e4] sm:$0xf] }
  0x4d   :  { %v3369_v58 = vor.u32 %v4354_v54, %v3366_v55  ;;  %v4306_v54 = vld [vmem:[#allocation16 + $0x64] sm:$0xf] }
  0x50   :  { %434 = vmatpush.bf16.msra.mxu1 %v3077_v60  ;;  %447 = vmatpush.bf16.msra.mxu2 %v3081_v62  ;;  %v3220_v60 = vld [vmem:[#allocation16 + $0xc0] sm:$0xf] }
  0x51   :  { %v3348_v62 = vld [vmem:[#allocation16 + $0x1c0] sm:$0xf] }
  0x54   :  { %435 = vmatpush.bf16.msra.mxu1 %v3069_v4  ;;  %448 = vmatpush.bf16.msra.mxu2 %v3073_v6  ;;  %v3349_v4 = vor.u32 %v4352_v2, %v3348_v62  ;;  %v4350_v6 = vld [vmem:[#allocation16 + $0x1c4] sm:$0xf]  ;;  %v3284_v2 = vld [vmem:[#allocation16 + $0x140] sm:$0xf] }
  0x58   :  { %436 = vmatpush.bf16.msra.mxu1 %v3061_v13  ;;  %v3204_v13 = vld [vmem:[#allocation16 + $0xa0] sm:$0xf] }
  0xc3   :  { %v274_v10 = vpop.f32.mrf.mxu0 }
  0xc4   :  { %v5101_v12 = vadd.f32 %v4604_v9, %v274_v10  ;;  %v4278_v9 = vld [vmem:[#allocation11 + $0x4] sm:$0xf]  ;;  %v3062_v10 = vld [vmem:[#allocation11 + $0x8] sm:$0xf0] }
  0xc5   :  { %v3065_v15 = vor.u32 %v4278_v9, %v3062_v10 }
  0xc6   :  { %v278_v20 = vrot.slane %v5101_v12, 4 }
  0xc7   :  { %449 = vmatpush.bf16.msra.mxu2 %v3065_v15 }
  0xc8   :  { %v279_v26 = vadd.f32 %v278_v20, %v5101_v12 }
  0xca   :  { %v280_v32 = vrot.slane %v279_v26, 2 }
  0xcb   :  { %v276_v34 = vpop.f32.mrf.mxu0  ;;  %977 = vmatpush.bf16.msrb.mxu2 %v3369_v58  ;;  %v4338_v58 = vld [vmem:[#allocation16 + $0x164] sm:$0xf] }
  0xcc   :  { %v281_v36 = vadd.f32 %v280_v32, %v279_v26 }
  0xce   :  { %v282_v42 = vrot.slane %v281_v36, 1 }
  0xd0   :  { %v283_v45 = vadd.f32 %v282_v42, %v281_v36  ;;  %v346_v42 = vperm.slane %v343_v37, 1  ;;  %v4310_v37 = vld [vmem:[#allocation16 + $0x84] sm:$0xf] }
  0xd2   :  { %v291_v51 = vmul.f32 %v5105_v43, %v283_v45  ;;  %v4324_v45 = vld [vmem:[#allocation16 + $0xec] sm:$0xf0] }
  0xd3   :  { %v3237_v47 = vor.u32 %v4324_v45, %v3236_v44 }
  0xd4   :  { %v292_v53 = vsub.f32 %v5101_v12, %v291_v51 }
  0xd5   :  { %938 = vmatpush.bf16.msra.mxu3 %v3237_v47  ;;  %v3172_v47 = vld [vmem:[#allocation16 + $0x60] sm:$0xf] }
  0xd6   :  { %v293_v59 = vmul.f32 %v292_v53, %v292_v53  ;;  %v3241_v53 = vor.u32 %v4322_v49, %v3238_v50  ;;  %v3300_v49 = vld [vmem:[#allocation16 + $0x160] sm:$0xf] }
  0xd8   :  { %v294_v61 = vrot.slane %v293_v59, 4  ;;  %964 = vmatpush.bf16.msrb.mxu1 %v3241_v53  ;;  %v4340_v53 = vld [vmem:[#allocation16 + $0x16c] sm:$0xf0] }
  0xd9   :  { %v3301_v55 = vor.u32 %v4340_v53, %v3300_v49  ;;  %v4325_v53 = vld [vmem:[#allocation16 + $0xf4] sm:$0xf0] }
  0xda   :  { %v295_v3 = vadd.f32 %v294_v61, %v293_v59  ;;  %v4320_v61 = vld [vmem:[#allocation16 + $0xcc] sm:$0xf0] }
  0xdb   :  { %v3221_v1 = vor.u32 %v4320_v61, %v3220_v60 }
  0xdc   :  { %v296_v5 = vrot.slane %v295_v3, 2 }
  0xdd   :  { %939 = vmatpush.bf16.msra.mxu3 %v3221_v1  ;;  %v4304_v1 = vld [vmem:[#allocation16 + $0x4c] sm:$0xf0] }
  0xde   :  { %v297_v11 = vadd.f32 %v296_v5, %v295_v3  ;;  %v4318_v3 = vld [vmem:[#allocation16 + $0xc4] sm:$0xf]  ;;  %v3222_v5 = vld [vmem:[#allocation16 + $0xd0] sm:$0xf0] }
  0xdf   :  { %v3225_v10 = vor.u32 %v4318_v3, %v3222_v5 }
  0xe0   :  { %v298_v14 = vrot.slane %v297_v11, 1 }
  0xe1   :  { %965 = vmatpush.bf16.msrb.mxu1 %v3225_v10  ;;  %v4334_v10 = vld [vmem:[#allocation16 + $0x144] sm:$0xf] }
  0xe2   :  { %v299_v16 = vadd.f32 %v298_v14, %v297_v11  ;;  %v3353_v11 = vor.u32 %v4350_v6, %v3350_v7  ;;  %v4316_v14 = vld [vmem:[#allocation16 + $0xac] sm:$0xf0]  ;;  %v4302_v7 = vld [vmem:[#allocation16 + $0x44] sm:$0xf] }
  0xe3   :  { %v4336_v6 = vld [vmem:[#allocation16 + $0x14c] sm:$0xf0] }
  0xe4   :  { %v300_v17 = vmul.f32 %v299_v16, %v5105_v43  ;;  %978 = vmatpush.bf16.msrb.mxu2 %v3353_v11  ;;  %v3286_v11 = vld [vmem:[#allocation16 + $0x150] sm:$0xf0] }
  0xe6   :  { %v302_v18 = vadd.f32 1e-05, %v300_v17  ;;  %v3205_v17 = vor.u32 %v4316_v14, %v3204_v13 }
  0xe8   :  { %4607 = vrsqrt.f32 %v302_v18  ;;  %vm309_vm3 = vweird.f32 %v302_v18  ;;  %940 = vmatpush.bf16.msra.mxu3 %v3205_v17  ;;  %v3140_v17 = vld [vmem:[#allocation16 + $0x20] sm:$0xf] }
  0xee   :  { %v4608_v19 = vpop.eup %4607 }
  0xef   :  { %v304_v20 = vmul.f32 %v4608_v19, %v302_v18  ;;  %vm310_vm2 = vweird.f32 %v4608_v19  ;;  %v3332_v18 = vld [vmem:[#allocation16 + $0x1a0] sm:$0xf] }
  0xf0   :  { %vm311_vm4 = vmor %vm309_vm3, %vm310_vm2 }
  0xf1   :  { %v305_v21 = vmul.f32 %v4608_v19, %v304_v20 }
  0xf3   :  { %v306_v22 = vmul.f32 0.5, %v305_v21 }
  0xf5   :  { %v307_v23 = vsub.f32 1.5, %v306_v22  ;;  %v4314_v22 = vld [vmem:[#allocation16 + $0xa4] sm:$0xf] }
  0xf7   :  { %v308_v25 = vmul.f32 %v4608_v19, %v307_v23  ;;  %v3206_v23 = vld [vmem:[#allocation16 + $0xb0] sm:$0xf0] }
  0xf9   :  { %v312_v26 = vsel %vm311_vm4, %v4608_v19, %v308_v25  ;;  %v4348_v19 = vld [vmem:[#allocation16 + $0x1ac] sm:$0xf0] }
  0xfa   :  { %v313_v27 = vmul.f32 %v312_v26, %v301_v24  ;;  %v3333_v21 = vor.u32 %v4348_v19, %v3332_v18  ;;  %v4346_v24 = vld [vmem:[#allocation16 + $0x1a4] sm:$0xf]  ;;  %v4300_v18 = vld [vmem:[#allocation16 + $0x2c] sm:$0xf0]  ;;  %v3268_v19 = vld [vmem:[#allocation16 + $0x120] sm:$0xf] }
  0xfc   :  { %v315_v29 = vmul.f32 %v313_v27, %v291_v51  ;;  %v318_v30 = vperm.slane %v313_v27, 0  ;;  %v3209_v27 = vor.u32 %v4314_v22, %v3206_v23  ;;  %v3141_v22 = vor.u32 %v4300_v18, %v3140_v17  ;;  %v4332_v23 = vld [vmem:[#allocation16 + $0x12c] sm:$0xf0]  ;;  %v4317_v18 = vld [vmem:[#allocation16 + $0xb4] sm:$0xf0] }
  0xfe   :  { %v316_v31 = vsub.f32 %v314_v28, %v315_v29  ;;  %v320_v32 = vmul.f32 %v318_v30, %v5101_v12  ;;  %v3364_v12 = vld [vmem:[#allocation16 + $0x1e0] sm:$0xf]  ;;  %v3334_v28 = vld [vmem:[#allocation16 + $0x1b0] sm:$0xf0]  ;;  %966 = vmatpush.bf16.msrb.mxu1 %v3209_v27 }
  0xff   :  { %v3365_v52 = vor.u32 %v4356_v48, %v3364_v12  ;;  %v3337_v29 = vor.u32 %v4346_v24, %v3334_v28  ;;  %v3188_v30 = vld [vmem:[#allocation16 + $0x80] sm:$0xf]  ;;  %v4308_v48 = vld [vmem:[#allocation16 + $0x6c] sm:$0xf0]  ;;  %v4298_v24 = vld [vmem:[#allocation16 + $0x24] sm:$0xf] }
 0x100   :  { %v322_v33 = vperm.slane %v316_v31, 0  ;;  %v4312_v31 = vld [vmem:[#allocation16 + $0x8c] sm:$0xf0]  ;;  %v3142_v27 = vld [vmem:[#allocation16 + $0x30] sm:$0xf0] }
 0x101   :  { %951 = vmatpush.bf16.msrb.mxu0 %v3365_v52  ;;  %979 = vmatpush.bf16.msrb.mxu2 %v3337_v29  ;;  %v3173_v52 = vor.u32 %v4308_v48, %v3172_v47  ;;  %v4330_v28 = vld [vmem:[#allocation16 + $0x124] sm:$0xf]  ;;  %v3270_v29 = vld [vmem:[#allocation16 + $0x130] sm:$0xf0]  ;;  %v3244_v48 = vld [vmem:[#allocation16 + $0xe8] sm:$0xf] }
 0x102   :  { %v324_v34 = vadd.f32 %v322_v33, %v320_v32  ;;  %v3316_v32 = vld [vmem:[#allocation16 + $0x180] sm:$0xf]  ;;  %v3254_v47 = vld [vmem:[#allocation16 + $0x110] sm:$0xf0] }
 0x104   :  { %v325_v35 = vmax.f32 %v324_v34, 0.0 }
 0x105   :  { %952 = vmatpush.bf16.msrb.mxu0 %v3349_v4 }
 0x106   :  { %v326_v36 = vpack.c.bf16 %v325_v35, %v325_v35  ;;  %v3189_v35 = vor.u32 %v4312_v31, %v3188_v30 }
 0x108   :  { %437 = vmatmul.bf16.vlgmr.msra.gmra.mxu1 %v326_v36  ;;  %450 = vmatmul.bf16.vlgmr.msra.gmra.mxu2 %v326_v36  ;;  %v4344_v36 = vld [vmem:[#allocation16 + $0x18c] sm:$0xf0] }
 0x109   :  { %953 = vmatpush.bf16.msrb.mxu0 %v3333_v21  ;;  %941 = vmatpush.bf16.msra.mxu3 %v3189_v35  ;;  %v4296_v35 = vld [vmem:[#allocation16 + $0xc] sm:$0xf0] }
 0x10d   :  { %942 = vmatpush.bf16.msra.mxu3 %v3173_v52 }
 0x185   :  { %v438_v39 = vpop.f32.mrf.mxu1 }
 0x186   :  { %v5114_v40 = vadd.f32 %v438_v39, %v345_v38  ;;  %v3317_v38 = vor.u32 %v4344_v36, %v3316_v32  ;;  %v3190_v39 = vld [vmem:[#allocation16 + $0x90] sm:$0xf0]  ;;  %v3145_v32 = vor.u32 %v4298_v24, %v3142_v27  ;;  %v3252_v36 = vld [vmem:[#allocation16 + $0x100] sm:$0xf]  ;;  %v4347_v27 = vld [vmem:[#allocation16 + $0x1ac] sm:$0xf] }
 0x187   :  { %v3193_v12 = vor.u32 %v4310_v37, %v3190_v39 }
 0x188   :  { %v455_v41 = vrot.slane %v5114_v40, 4  ;;  %954 = vmatpush.bf16.msrb.mxu0 %v3317_v38 }
 0x189   :  { %967 = vmatpush.bf16.msrb.mxu1 %v3193_v12 }
 0x18a   :  { %v456_v46 = vadd.f32 %v455_v41, %v5114_v40  ;;  %v4342_v41 = vld [vmem:[#allocation16 + $0x184] sm:$0xf] }
 0x18b   :  { %v451_v51 = vpop.f32.mrf.mxu2 }
 0x18c   :  { %v457_v56 = vrot.slane %v456_v46, 2  ;;  %v5118_v57 = vadd.f32 %v451_v51, %v346_v42  ;;  %v3318_v42 = vld [vmem:[#allocation16 + $0x190] sm:$0xf0]  ;;  %955 = vmatpush.bf16.msrb.mxu0 %v3301_v55  ;;  %v3372_v55 = vld [vmem:[#allocation16 + $0x1e8] sm:$0xf] }
 0x18d   :  { %v440_v59 = vpop.f32.mrf.mxu1 }
 0x18e   :  { %v458_v63 = vadd.f32 %v457_v56, %v456_v46  ;;  %v461_v0 = vrot.slane %v5118_v57, 4  ;;  %v3321_v46 = vor.u32 %v4342_v41, %v3318_v42  ;;  %v3174_v56 = vld [vmem:[#allocation16 + $0x70] sm:$0xf0]  ;;  %v4328_v41 = vld [vmem:[#allocation16 + $0x10c] sm:$0xf0] }
 0x18f   :  { %v3302_v59 = vld [vmem:[#allocation16 + $0x170] sm:$0xf0]  ;;  %v3177_v62 = vor.u32 %v4306_v54, %v3174_v56  ;;  %v4294_v42 = vld [vmem:[#allocation16 + $0x4] sm:$0xf]  ;;  %v3245_v54 = vor.u32 %v4325_v53, %v3244_v48  ;;  %v4357_v56 = vld [vmem:[#allocation16 + $0x1f4] sm:$0xf0] }
 0x190   :  { %v459_v8 = vrot.slane %v458_v63, 1  ;;  %v462_v9 = vadd.f32 %v461_v0, %v5118_v57  ;;  %980 = vmatpush.bf16.msrb.mxu2 %v3321_v46  ;;  %v3156_v0 = vld [vmem:[#allocation16 + $0x40] sm:$0xf]  ;;  %v4326_v46 = vld [vmem:[#allocation16 + $0x104] sm:$0xf] }
 0x191   :  { %968 = vmatpush.bf16.msrb.mxu1 %v3177_v62  ;;  %v3157_v5 = vor.u32 %v4304_v1, %v3156_v0  ;;  %v3257_v52 = vor.u32 %v4326_v46, %v3254_v47  ;;  %v4355_v62 = vld [vmem:[#allocation16 + $0x1ec] sm:$0xf] }
 0x192   :  { %v460_v15 = vadd.f32 %v459_v8, %v458_v63  ;;  %v463_v16 = vrot.slane %v462_v9, 2  ;;  %v3305_v63 = vor.u32 %v4338_v58, %v3302_v59  ;;  %v3285_v8 = vor.u32 %v4336_v6, %v3284_v2  ;;  %v4323_v58 = vld [vmem:[#allocation16 + $0xec] sm:$0xf]  ;;  %v3228_v2 = vld [vmem:[#allocation16 + $0xc8] sm:$0xf] }
 0x193   :  { %v453_v20 = vpop.f32.mrf.mxu2  ;;  %943 = vmatpush.bf16.msra.mxu3 %v3157_v5 }
 0x194   :  { %v5123_v25 = vmul.f32 %v460_v15, %v5105_v43  ;;  %v464_v26 = vadd.f32 %v463_v16, %v462_v9  ;;  %981 = vmatpush.bf16.msrb.mxu2 %v3305_v63  ;;  %v3158_v9 = vld [vmem:[#allocation16 + $0x50] sm:$0xf0]  ;;  %v3289_v16 = vor.u32 %v4334_v10, %v3286_v11  ;;  %956 = vmatpush.bf16.msrb.mxu0 %v3285_v8  ;;  %v3374_v63 = vld [vmem:[#allocation16 + $0x1f8] sm:$0xf0]  ;;  %v4319_v8 = vld [vmem:[#allocation16 + $0xcc] sm:$0xf] }
 0x195   :  { %v3161_v15 = vor.u32 %v4302_v7, %v3158_v9  ;;  %v3377_v1 = vor.u32 %v4355_v62, %v3374_v63  ;;  %v4353_v7 = vld [vmem:[#allocation16 + $0x1d4] sm:$0xf0]  ;;  %v3230_v9 = vld [vmem:[#allocation16 + $0xd8] sm:$0xf0] }
 0x196   :  { %v469_v33 = vsub.f32 %v5114_v40, %v5123_v25  ;;  %v465_v34 = vrot.slane %v464_v26, 1  ;;  %v3233_v11 = vor.u32 %v4319_v8, %v3230_v9  ;;  %v3310_v63 = vld [vmem:[#allocation16 + $0x178] sm:$0xf0]  ;;  %v4303_v9 = vld [vmem:[#allocation16 + $0x4c] sm:$0xf] }
 0x197   :  { %969 = vmatpush.bf16.msrb.mxu1 %v3161_v15  ;;  %944 = vmatpush.bf16.msra.mxu3 %v3141_v22  ;;  %v3212_v15 = vld [vmem:[#allocation16 + $0xa8] sm:$0xf]  ;;  %v4315_v22 = vld [vmem:[#allocation16 + $0xac] sm:$0xf] }
 0x198   :  { %v471_v44 = vmul.f32 %v469_v33, %v469_v33  ;;  %v466_v45 = vadd.f32 %v465_v34, %v464_v26  ;;  %982 = vmatpush.bf16.msrb.mxu2 %v3289_v16  ;;  %v3269_v26 = vor.u32 %v4332_v23, %v3268_v19  ;;  %v3273_v33 = vor.u32 %v4330_v28, %v3270_v29  ;;  %v3124_v34 = vld [vmem:[#allocation16] sm:$0xf]  ;;  %v3340_v19 = vld [vmem:[#allocation16 + $0x1a8] sm:$0xf]  ;;  %v3214_v23 = vld [vmem:[#allocation16 + $0xb8] sm:$0xf0] }
 0x199   :  { %v3125_v39 = vor.u32 %v4296_v35, %v3124_v34  ;;  %v3342_v28 = vld [vmem:[#allocation16 + $0x1b8] sm:$0xf0]  ;;  %v3196_v29 = vld [vmem:[#allocation16 + $0x88] sm:$0xf]  ;;  %v4345_v35 = vld [vmem:[#allocation16 + $0x194] sm:$0xf0] }
 0x19a   :  { %v473_v50 = vrot.slane %v471_v44, 4  ;;  %v5128_v51 = vmul.f32 %v466_v45, %v5105_v43  ;;  %957 = vmatpush.bf16.msrb.mxu0 %v3269_v26  ;;  %v3253_v45 = vor.u32 %v4328_v41, %v3252_v36  ;;  %v3324_v34 = vld [vmem:[#allocation16 + $0x188] sm:$0xf]  ;;  %v4311_v36 = vld [vmem:[#allocation16 + $0x8c] sm:$0xf] }
 0x19b   :  { %970 = vmatpush.bf16.msrb.mxu1 %v3145_v32  ;;  %945 = vmatpush.bf16.msra.mxu3 %v3125_v39  ;;  %v3345_v32 = vor.u32 %v4347_v27, %v3342_v28  ;;  %v4343_v41 = vld [vmem:[#allocation16 + $0x18c] sm:$0xf]  ;;  %v3150_v28 = vld [vmem:[#allocation16 + $0x38] sm:$0xf0] }
 0x19c   :  { %v474_v60 = vadd.f32 %v473_v50, %v471_v44  ;;  %v470_v61 = vsub.f32 %v5118_v57, %v5128_v51  ;;  %v3126_v44 = vld [vmem:[#allocation16 + $0x10] sm:$0xf0]  ;;  %983 = vmatpush.bf16.msrb.mxu2 %v3273_v33  ;;  %v4313_v33 = vld [vmem:[#allocation16 + $0x94] sm:$0xf0]  ;;  %v4299_v27 = vld [vmem:[#allocation16 + $0x2c] sm:$0xf] }
 0x19d   :  { %v3129_v12 = vor.u32 %v4294_v42, %v3126_v44  ;;  %v3197_v39 = vor.u32 %v4313_v33, %v3196_v29  ;;  %v3326_v42 = vld [vmem:[#allocation16 + $0x198] sm:$0xf0]  ;;  %v3325_v44 = vor.u32 %v4345_v35, %v3324_v34  ;;  %v4331_v29 = vld [vmem:[#allocation16 + $0x12c] sm:$0xf]  ;;  %v4297_v33 = vld [vmem:[#allocation16 + $0x14] sm:$0xf0] }
 0x19e   :  { %v475_v3 = vrot.slane %v474_v60, 2  ;;  %v472_v4 = vmul.f32 %v470_v61, %v470_v61  ;;  %958 = vmatpush.bf16.msrb.mxu0 %v3253_v45  ;;  %v3246_v61 = vld [vmem:[#allocation16 + $0xf8] sm:$0xf0] }
 0x19f   :  { %971 = vmatpush.bf16.msrb.mxu1 %v3129_v12  ;;  %990 = vmatpush.bf16.msrb.mxu3 %v3245_v54  ;;  %v3249_v0 = vor.u32 %v4323_v58, %v3246_v61  ;;  %v3329_v12 = vor.u32 %v4343_v41, %v3326_v42  ;;  %v3308_v54 = vld [vmem:[#allocation16 + $0x168] sm:$0xf]  ;;  %v4339_v61 = vld [vmem:[#allocation16 + $0x16c] sm:$0xf]  ;;  %v487_v34 = vld [vmem:[#allocation13] sm:$0x3] }
 0x1a0   :  { %v476_v13 = vadd.f32 %v475_v3, %v474_v60  ;;  %v479_v14 = vrot.slane %v472_v4, 4  ;;  %v3373_v60 = vor.u32 %v4357_v56, %v3372_v55  ;;  %984 = vmatpush.bf16.msrb.mxu2 %v3257_v52  ;;  %v4321_v3 = vld [vmem:[#allocation16 + $0xd4] sm:$0xf0]  ;;  %v4295_v42 = vld [vmem:[#allocation16 + $0xc] sm:$0xf] }
 0x1a1   :  { %v3229_v6 = vor.u32 %v4321_v3, %v3228_v2  ;;  %v4309_v52 = vld [vmem:[#allocation16 + $0x74] sm:$0xf0] }
 0x1a2   :  { %v477_v20 = vrot.slane %v476_v13, 1  ;;  %v480_v21 = vadd.f32 %v479_v14, %v472_v4  ;;  %v3356_v4 = vld [vmem:[#allocation16 + $0x1c8] sm:$0xf]  ;;  %1003 = vmatpush.bf16.msra.mxu0 %v3373_v60  ;;  %v3358_v14 = vld [vmem:[#allocation16 + $0x1d8] sm:$0xf0] }
 0x1a3   :  { %1016 = vmatpush.bf16.msra.mxu1 %v3249_v0  ;;  %v3357_v10 = vor.u32 %v4353_v7, %v3356_v4  ;;  %991 = vmatpush.bf16.msrb.mxu3 %v3229_v6  ;;  %v4341_v55 = vld [vmem:[#allocation16 + $0x174] sm:$0xf0]  ;;  %v3182_v60 = vld [vmem:[#allocation16 + $0x78] sm:$0xf0]  ;;  %v3164_v0 = vld [vmem:[#allocation16 + $0x48] sm:$0xf]  ;;  %v3313_v4 = vor.u32 %v4339_v61, %v3310_v63 }
 0x1a4   :  { %v478_v30 = vadd.f32 %v477_v20, %v476_v13  ;;  %v481_v31 = vrot.slane %v480_v21, 2  ;;  %1029 = vmatpush.bf16.msra.mxu2 %v3377_v1  ;;  %v4351_v13 = vld [vmem:[#allocation16 + $0x1cc] sm:$0xf]  ;;  %v3213_v20 = vor.u32 %v4317_v18, %v3212_v15  ;;  %v3309_v58 = vor.u32 %v4341_v55, %v3308_v54  ;;  %v4305_v1 = vld [vmem:[#allocation16 + $0x54] sm:$0xf0] }
 0x1a5   :  { %v3361_v17 = vor.u32 %v4351_v13, %v3358_v14  ;;  %v3292_v6 = vld [vmem:[#allocation16 + $0x148] sm:$0xf]  ;;  %v4337_v7 = vld [vmem:[#allocation16 + $0x154] sm:$0xf0] }
 0x1a6   :  { %v485_v37 = vmul.f32 %v478_v30, %v5105_v43  ;;  %v482_v38 = vadd.f32 %v481_v31, %v480_v21  ;;  %v4349_v21 = vld [vmem:[#allocation16 + $0x1b4] sm:$0xf0]  ;;  %1004 = vmatpush.bf16.msra.mxu0 %v3357_v10  ;;  %v3217_v31 = vor.u32 %v4315_v22, %v3214_v23  ;;  %v3293_v8 = vor.u32 %v4337_v7, %v3292_v6  ;;  %v3166_v10 = vld [vmem:[#allocation16 + $0x58] sm:$0xf0]  ;;  %v3148_v18 = vld [vmem:[#allocation16 + $0x28] sm:$0xf] }
 0x1a7   :  { %v3341_v26 = vor.u32 %v4349_v21, %v3340_v19  ;;  %1017 = vmatpush.bf16.msra.mxu1 %v3233_v11  ;;  %992 = vmatpush.bf16.msrb.mxu3 %v3213_v20  ;;  %v4335_v11 = vld [vmem:[#allocation16 + $0x14c] sm:$0xf]  ;;  %v3169_v15 = vor.u32 %v4303_v9, %v3166_v10  ;;  %v3276_v20 = vld [vmem:[#allocation16 + $0x128] sm:$0xf]  ;;  %v4333_v21 = vld [vmem:[#allocation16 + $0x134] sm:$0xf0] }
 0x1a8   :  { %v5133_v49 = vadd.f32 1e-05, %v485_v37  ;;  %v483_v50 = vrot.slane %v482_v38, 1  ;;  %1030 = vmatpush.bf16.msra.mxu2 %v3361_v17  ;;  %v3198_v37 = vld [vmem:[#allocation16 + $0x98] sm:$0xf0] }
 0x1a9   :  { %v3201_v45 = vor.u32 %v4311_v36, %v3198_v37  ;;  %v3294_v17 = vld [vmem:[#allocation16 + $0x158] sm:$0xf0]  ;;  %v3153_v36 = vor.u32 %v4299_v27, %v3150_v28  ;;  %v4466_v27 = vld [vmem:[#allocation20 + $0x360] sm:$0xf0]  ;;  %v4024_v28 = vld [vmem:[#allocation20 + $0x508] sm:$0xf] }
 0x1aa   :  { %4609 = vrsqrt.f32 %v5133_v49  ;;  %v484_v59 = vadd.f32 %v483_v50, %v482_v38  ;;  %1005 = vmatpush.bf16.msra.mxu0 %v3341_v26  ;;  %v3180_v50 = vld [vmem:[#allocation16 + $0x68] sm:$0xf]  ;;  %v3297_v19 = vor.u32 %v4335_v11, %v3294_v17  ;;  %vm496_vm10 = vweird.f32 %v5133_v49 }
 0x1ab   :  { %1018 = vmatpush.bf16.msra.mxu1 %v3217_v31  ;;  %993 = vmatpush.bf16.msrb.mxu3 %v3197_v39  ;;  %v3181_v53 = vor.u32 %v4309_v52, %v3180_v50  ;;  %v3278_v31 = vld [vmem:[#allocation16 + $0x138] sm:$0xf0]  ;;  %v4329_v39 = vld [vmem:[#allocation16 + $0x114] sm:$0xf0] }
 0x1ac   :  { %v486_v5 = vmul.f32 %v484_v59, %v5105_v43  ;;  %1031 = vmatpush.bf16.msra.mxu2 %v3345_v32  ;;  %v4307_v59 = vld [vmem:[#allocation16 + $0x6c] sm:$0xf]  ;;  %v3132_v32 = vld [vmem:[#allocation16 + $0x8] sm:$0xf]  ;;  %v3281_v37 = vor.u32 %v4331_v29, %v3278_v31 }
 0x1ad   :  { %v3185_v62 = vor.u32 %v4307_v59, %v3182_v60  ;;  %v4522_v31 = vld [vmem:[#allocation20 + $0x520] sm:$0xf0] }
 0x1ae   :  { %v5137_v16 = vadd.f32 1e-05, %v486_v5  ;;  %1006 = vmatpush.bf16.msra.mxu0 %v3325_v44  ;;  %v3165_v5 = vor.u32 %v4305_v1, %v3164_v0  ;;  %v3134_v44 = vld [vmem:[#allocation16 + $0x18] sm:$0xf0] }
 0x1af   :  { %1019 = vmatpush.bf16.msra.mxu1 %v3201_v45  ;;  %994 = vmatpush.bf16.msrb.mxu3 %v3181_v53  ;;  %v3137_v52 = vor.u32 %v4295_v42, %v3134_v44  ;;  %v4403_v42 = vld [vmem:[#allocation20 + $0x168] sm:$0xf0] }
 0x1b0   :  { %v5139_v24 = vpop.eup %4609  ;;  %4611 = vrsqrt.f32 %v5137_v16  ;;  %1032 = vmatpush.bf16.msra.mxu2 %v3329_v12  ;;  %vm506_vm6 = vweird.f32 %v5137_v16  ;;  %v4327_v12 = vld [vmem:[#allocation16 + $0x10c] sm:$0xf] }
 0x1b1   :  { %v491_v30 = vmul.f32 %v5139_v24, %v5133_v49  ;;  %vm497_vm9 = vweird.f32 %v5139_v24  ;;  %v3133_v49 = vor.u32 %v4297_v33, %v3132_v32  ;;  %v4248_v32 = vld [vmem:[#allocation20 + $0x6c8] sm:$0xf]  ;;  %v4578_v33 = vld [vmem:[#allocation20 + $0x6e0] sm:$0xf0] }
 0x1b2   :  { %1007 = vmatpush.bf16.msra.mxu0 %v3309_v58  ;;  %vm498_vm11 = vmor %vm496_vm10, %vm497_vm9  ;;  %v517_v58 = vld [vmem:[#allocation14] sm:$0x3]  ;;  %vm1159_vm9 = vcmask 1042434   ;;  %vm1161_vm10 = vcmask 1041408  }
 0x1b3   :  { %v492_v38 = vmul.f32 %v5139_v24, %v491_v30  ;;  %1020 = vmatpush.bf16.msra.mxu1 %v3185_v62  ;;  %995 = vmatpush.bf16.msrb.mxu3 %v3165_v5  ;;  %v3277_v30 = vor.u32 %v4333_v21, %v3276_v20  ;;  %v3576_v20 = vld [vmem:[#allocation20 + $0x188] sm:$0xf]  ;;  %v4410_v21 = vld [vmem:[#allocation20 + $0x1a0] sm:$0xf0] }
 0x1b4   :  { %1033 = vmatpush.bf16.msra.mxu2 %v3313_v4 }
 0x1b5   :  { %v493_v47 = vmul.f32 0.5, %v492_v38  ;;  %v3260_v38 = vld [vmem:[#allocation16 + $0x108] sm:$0xf] }
 0x1b6   :  { %v5145_v46 = vpop.eup %4611  ;;  %1008 = vmatpush.bf16.msra.mxu0 %v3293_v8 }
 0x1b7   :  { %v501_v48 = vmul.f32 %v5145_v46, %v5137_v16  ;;  %vm507_vm5 = vweird.f32 %v5145_v46  ;;  %v494_v2 = vsub.f32 1.5, %v493_v47  ;;  %v4301_v16 = vld [vmem:[#allocation16 + $0x34] sm:$0xf0]  ;;  %1021 = vmatpush.bf16.msra.mxu1 %v3169_v15  ;;  %v3262_v47 = vld [vmem:[#allocation16 + $0x118] sm:$0xf0] }
 0x1b8   :  { %vm5154_vm7 = vmor %vm506_vm6, %vm507_vm5  ;;  %v3149_v26 = vor.u32 %v4301_v16, %v3148_v18  ;;  %1034 = vmatpush.bf16.msra.mxu2 %v3297_v19  ;;  %v3265_v53 = vor.u32 %v4327_v12, %v3262_v47  ;;  %v3772_v12 = vld [vmem:[#allocation20 + $0x310] sm:$0xf]  ;;  %v4459_v47 = vld [vmem:[#allocation20 + $0x328] sm:$0xf0] }
 0x1b9   :  { %v502_v56 = vmul.f32 %v5145_v46, %v501_v48  ;;  %v495_v22 = vmul.f32 %v5139_v24, %v494_v2  ;;  %v3261_v48 = vor.u32 %v4329_v39, %v3260_v38 }
 0x1ba   :  { %996 = vmatpush.bf16.msrb.mxu3 %v3149_v26  ;;  %1009 = vmatpush.bf16.msra.mxu0 %v3277_v30  ;;  %v3800_v26 = vld [vmem:[#allocation20 + $0x348] sm:$0xf] }
 0x1bb   :  { %v503_v3 = vmul.f32 0.5, %v502_v56  ;;  %v499_v45 = vsel %vm498_vm11, %v5139_v24, %v495_v22  ;;  %1022 = vmatpush.bf16.msra.mxu1 %v3153_v36  ;;  %v3801_v30 = vor.u32 %v4466_v27, %v3800_v26  ;;  %v4025_v36 = vor.u32 %v4522_v31, %v4024_v28  ;;  %v4445_v26 = vld [vmem:[#allocation20 + $0x2b8] sm:$0xf0]  ;;  %v3940_v27 = vld [vmem:[#allocation20 + $0x460] sm:$0xf] }
 0x1bc   :  { %1035 = vmatpush.bf16.msra.mxu2 %v3281_v37  ;;  %v4249_v37 = vor.u32 %v4578_v33, %v4248_v32  ;;  %v4501_v28 = vld [vmem:[#allocation20 + $0x478] sm:$0xf0] }
 0x1bd   :  { %v504_v13 = vsub.f32 1.5, %v503_v3  ;;  %v3941_v33 = vor.u32 %v4501_v28, %v3940_v27 }
 0x1be   :  { %997 = vmatpush.bf16.msrb.mxu3 %v3133_v49  ;;  %1010 = vmatpush.bf16.msra.mxu0 %v3261_v48 }
 0x1bf   :  { %v505_v23 = vmul.f32 %v5145_v46, %v504_v13  ;;  %1023 = vmatpush.bf16.msra.mxu1 %v3137_v52  ;;  %v3773_v52 = vor.u32 %v4459_v47, %v3772_v12  ;;  %v3688_v47 = vld [vmem:[#allocation20 + $0x268] sm:$0xf] }
 0x1c0   :  { %1036 = vmatpush.bf16.msra.mxu2 %v3265_v53  ;;  %v4515_v53 = vld [vmem:[#allocation20 + $0x4e8] sm:$0xf0] }
 0x1c1   :  { %v509_v35 = vsel %vm5154_vm7, %v5145_v46, %v505_v23  ;;  %v3577_v23 = vor.u32 %v4410_v21, %v3576_v20 }
 0x1c2   :  { %v512_v41 = vrot.slane %v509_v35, 7 }
 0x1c4   :  { %v514_v46 = vsel %vm513_vm8, %v499_v45, %v512_v41  ;;  %v3548_v41 = vld [vmem:[#allocation20 + $0x150] sm:$0xf] }
 0x1c5   :  { %v516_v50 = vmul.f32 %v514_v46, %v487_v34  ;;  %v3549_v49 = vor.u32 %v4403_v42, %v3548_v41  ;;  %v3996_v46 = vld [vmem:[#allocation20 + $0x4d0] sm:$0xf]  ;;  %v3464_v42 = vld [vmem:[#allocation20 + $0xa8] sm:$0xf] }
 0x1c7   :  { %v520_v54 = vperm.slane %v516_v50, 1  ;;  %v519_v55 = vperm.slane %v516_v50, 0 }
 0x1c9   :  { %v524_v56 = vmul.f32 %v520_v54, %v5128_v51  ;;  %v523_v59 = vmul.f32 %v519_v55, %v5123_v25  ;;  %v532_v62 = vmul.f32 %v520_v54, %v5118_v57  ;;  %v531_v63 = vmul.f32 %v519_v55, %v5114_v40  ;;  %v5177_v40 = vld [vmem:[%s5355_s10] sm:$0xf]  ;;  %v4220_v54 = vld [vmem:[#allocation20 + $0x690] sm:$0xf]  ;;  %v4571_v55 = vld [vmem:[#allocation20 + $0x6a8] sm:$0xf0] }
 0x1ca   :  { %v611_v7 = vperm.slane %v5177_v40, 1  ;;  %v610_v8 = vperm.slane %v5177_v40, 0 }
 0x1cb   :  { %v527_v24 = vrot.slane %v524_v56, 7 }
 0x1cd   :  { %v528_v60 = vsel %vm513_vm8, %v523_v59, %v527_v24  ;;  %v613_v24 = vperm.slane %v5177_v40, 3  ;;  %v4221_v59 = vor.u32 %v4571_v55, %v4220_v54  ;;  %v4494_v54 = vld [vmem:[#allocation20 + $0x440] sm:$0xf0] }
 0x1ce   :  { %v530_v61 = vsub.f32 %v517_v58, %v528_v60  ;;  %v3997_v58 = vor.u32 %v4515_v53, %v3996_v46  ;;  %v4438_v46 = vld [vmem:[#allocation20 + $0x280] sm:$0xf0]  ;;  %v3912_v53 = vld [vmem:[#allocation20 + $0x428] sm:$0xf] }
 0x1d0   :  { %v534_v0 = vperm.slane %v530_v61, 0  ;;  %v535_v1 = vperm.slane %v530_v61, 1  ;;  %v612_v61 = vperm.slane %v5177_v40, 2 }
 0x1d2   :  { %v538_v2 = vadd.f32 %v534_v0, %v531_v63  ;;  %v539_v3 = vadd.f32 %v535_v1, %v532_v62  ;;  %v3520_v62 = vld [vmem:[#allocation20 + $0x118] sm:$0xf]  ;;  %v4396_v63 = vld [vmem:[#allocation20 + $0x130] sm:$0xf0] }
 0x1d3   :  { %v3521_v1 = vor.u32 %v4396_v63, %v3520_v62 }
 0x1d4   :  { %v540_v4 = vmax.f32 %v538_v2, 0.0  ;;  %v541_v5 = vmax.f32 %v539_v3, 0.0  ;;  %v3744_v2 = vld [vmem:[#allocation20 + $0x2d8] sm:$0xf]  ;;  %v4452_v3 = vld [vmem:[#allocation20 + $0x2f0] sm:$0xf0] }
 0x1d6   :  { %v542_v51 = vpack.c.bf16 %v540_v4, %v540_v4  ;;  %v543_v6 = vpack.c.bf16 %v541_v5, %v541_v5  ;;  %v3968_v4 = vld [vmem:[#allocation20 + $0x498] sm:$0xf] }
 0x1d8   :  { %946 = vmatmul.bf16.vlgmr.msra.gmra.mxu3 %v542_v51  ;;  %959 = vmatmul.bf16.vlgmr.msrb.gmra.mxu0 %v543_v6 }
 0x1d9   :  { %972 = vmatmul.bf16.vlgmr.msrb.gmra.mxu1 %v542_v51  ;;  %985 = vmatmul.bf16.vlgmr.msrb.gmra.mxu2 %v543_v6 }
 0x1da   :  { %2640 = vmatpush.bf16.msra.mxu3 %v3577_v23  ;;  %2653 = vmatpush.bf16.msrb.mxu0 %v3801_v30 }
 0x1db   :  { %2666 = vmatpush.bf16.msrb.mxu1 %v4025_v36  ;;  %2679 = vmatpush.bf16.msrb.mxu2 %v4249_v37 }
 0x1de   :  { %2641 = vmatpush.bf16.msra.mxu3 %v3549_v49  ;;  %2654 = vmatpush.bf16.msrb.mxu0 %v3773_v52  ;;  %v3689_v52 = vor.u32 %v4438_v46, %v3688_v47  ;;  %v3380_v47 = vld [vmem:[#allocation20] sm:$0xf]  ;;  %v4361_v46 = vld [vmem:[#allocation20 + $0x18] sm:$0xf0] }
 0x1df   :  { %2667 = vmatpush.bf16.msrb.mxu1 %v3997_v58  ;;  %2680 = vmatpush.bf16.msrb.mxu2 %v4221_v59  ;;  %v3913_v58 = vor.u32 %v4494_v54, %v3912_v53  ;;  %v4136_v59 = vld [vmem:[#allocation20 + $0x5e8] sm:$0xf]  ;;  %v3381_v53 = vor.u32 %v4361_v46, %v3380_v47  ;;  %v4417_v54 = vld [vmem:[#allocation20 + $0x1d8] sm:$0xf0] }
 0x1e2   :  { %2642 = vmatpush.bf16.msra.mxu3 %v3521_v1  ;;  %v3436_v1 = vld [vmem:[#allocation20 + $0x70] sm:$0xf] }
 0x1e8   :  { %998 = vmatmul.bf16.vlgmr.msrb.gmra.mxu3 %v542_v51  ;;  %1011 = vmatmul.bf16.vlgmr.msra.gmra.mxu0 %v543_v6 }
 0x1e9   :  { %1024 = vmatmul.bf16.vlgmr.msra.gmra.mxu1 %v542_v51  ;;  %1037 = vmatmul.bf16.vlgmr.msra.gmra.mxu2 %v543_v6  ;;  %v3745_v51 = vor.u32 %v4452_v3, %v3744_v2  ;;  %v4508_v6 = vld [vmem:[#allocation20 + $0x4b0] sm:$0xf0]  ;;  %v4375_v2 = vld [vmem:[#allocation20 + $0x88] sm:$0xf0] }
 0x1eb   :  { %2655 = vmatpush.bf16.msrb.mxu0 %v3745_v51  ;;  %v3660_v51 = vld [vmem:[#allocation20 + $0x230] sm:$0xf] }
 0x255   :  { %v960_v57 = vpop.f32.mrf.mxu0 }
 0x256   :  { %v973_v25 = vpop.f32.mrf.mxu1 }
 0x257   :  { %v974_v9 = vadd.f32 %v973_v25, %v611_v7  ;;  %v4564_v25 = vld [vmem:[#allocation20 + $0x670] sm:$0xf0] }
 0x25b   :  { %v947_v10 = vpop.f32.mrf.mxu3 }
 0x25c   :  { %v948_v11 = vadd.f32 %v947_v10, %v610_v8  ;;  %v986_v13 = vpop.f32.mrf.mxu2 }
 0x25d   :  { %v5181_v14 = vadd.f32 %v986_v13, %v974_v9  ;;  %v962_v15 = vpop.f32.mrf.mxu0  ;;  %v3969_v9 = vor.u32 %v4508_v6, %v3968_v4  ;;  %v4431_v6 = vld [vmem:[#allocation20 + $0x248] sm:$0xf0] }
 0x25e   :  { %v5183_v17 = vadd.f32 %v960_v57, %v948_v11  ;;  %v975_v18 = vpop.f32.mrf.mxu1  ;;  %v4192_v57 = vld [vmem:[#allocation20 + $0x658] sm:$0xf] }
 0x25f   :  { %v1048_v19 = vrot.slane %v5181_v14, 4  ;;  %v4193_v10 = vor.u32 %v4564_v25, %v4192_v57  ;;  %v3492_v18 = vld [vmem:[#allocation20 + $0xe0] sm:$0xf]  ;;  %2668 = vmatpush.bf16.msrb.mxu1 %v3969_v9  ;;  %v4487_v9 = vld [vmem:[#allocation20 + $0x408] sm:$0xf0] }
 0x260   :  { %v1042_v16 = vrot.slane %v5183_v17, 4 }
 0x261   :  { %v1049_v22 = vadd.f32 %v1048_v19, %v5181_v14  ;;  %v4389_v19 = vld [vmem:[#allocation20 + $0xf8] sm:$0xf0]  ;;  %2681 = vmatpush.bf16.msrb.mxu2 %v4193_v10 }
 0x262   :  { %v1043_v29 = vadd.f32 %v1042_v16, %v5183_v17  ;;  %v3716_v16 = vld [vmem:[#allocation20 + $0x2a0] sm:$0xf]  ;;  %v3493_v23 = vor.u32 %v4389_v19, %v3492_v18  ;;  %v4108_v18 = vld [vmem:[#allocation20 + $0x5b0] sm:$0xf]  ;;  %v4543_v19 = vld [vmem:[#allocation20 + $0x5c8] sm:$0xf0] }
 0x263   :  { %v1050_v34 = vrot.slane %v1049_v22, 2  ;;  %v949_v35 = vpop.f32.mrf.mxu3  ;;  %v3717_v32 = vor.u32 %v4445_v26, %v3716_v16  ;;  %2669 = vmatpush.bf16.msrb.mxu1 %v3941_v33  ;;  %v4368_v26 = vld [vmem:[#allocation20 + $0x50] sm:$0xf0] }
 0x264   :  { %v1044_v38 = vrot.slane %v1043_v29, 2  ;;  %v988_v39 = vpop.f32.mrf.mxu2  ;;  %v4557_v35 = vld [vmem:[#allocation20 + $0x638] sm:$0xf0]  ;;  %2643 = vmatpush.bf16.msra.mxu3 %v3493_v23  ;;  %v3408_v23 = vld [vmem:[#allocation20 + $0x38] sm:$0xf] }
 0x265   :  { %v1051_v44 = vadd.f32 %v1050_v34, %v1049_v22  ;;  %v1012_v45 = vpop.f32.mrf.mxu0  ;;  %v4164_v34 = vld [vmem:[#allocation20 + $0x620] sm:$0xf]  ;;  %2656 = vmatpush.bf16.msrb.mxu0 %v3717_v32  ;;  %v4424_v32 = vld [vmem:[#allocation20 + $0x210] sm:$0xf0] }
 0x266   :  { %v1045_v48 = vadd.f32 %v1044_v38, %v1043_v29  ;;  %v1025_v50 = vpop.f32.mrf.mxu1  ;;  %v4165_v38 = vor.u32 %v4557_v35, %v4164_v34 }
 0x267   :  { %v1052_v56 = vrot.slane %v1051_v44, 1  ;;  %v1026_v8 = vadd.f32 %v1025_v50, %v613_v24  ;;  %2670 = vmatpush.bf16.msrb.mxu1 %v3913_v58 }
 0x268   :  { %v1046_v60 = vrot.slane %v1045_v48, 1  ;;  %2682 = vmatpush.bf16.msrb.mxu2 %v4165_v38 }
 0x269   :  { %v1053_v0 = vadd.f32 %v1052_v56, %v1051_v44  ;;  %v4382_v44 = vld [vmem:[#allocation20 + $0xc0] sm:$0xf0]  ;;  %2657 = vmatpush.bf16.msrb.mxu0 %v3689_v52 }
 0x26a   :  { %v1047_v5 = vadd.f32 %v1046_v60, %v1045_v48  ;;  %v3465_v12 = vor.u32 %v4382_v44, %v3464_v42  ;;  %v4550_v60 = vld [vmem:[#allocation20 + $0x600] sm:$0xf0]  ;;  %v4080_v42 = vld [vmem:[#allocation20 + $0x578] sm:$0xf]  ;;  %v4536_v44 = vld [vmem:[#allocation20 + $0x590] sm:$0xf0] }
 0x26b   :  { %v5192_v7 = vmul.f32 %v1053_v0, %v5105_v43  ;;  %v999_v40 = vpop.f32.mrf.mxu3  ;;  %v4137_v0 = vor.u32 %v4550_v60, %v4136_v59 }
 0x26c   :  { %v5195_v11 = vmul.f32 %v1047_v5, %v5105_v43  ;;  %v1000_v13 = vadd.f32 %v999_v40, %v612_v61  ;;  %v1038_v15 = vpop.f32.mrf.mxu2  ;;  %2644 = vmatpush.bf16.msra.mxu3 %v3465_v12  ;;  %v3437_v5 = vor.u32 %v4375_v2, %v3436_v1  ;;  %v3884_v40 = vld [vmem:[#allocation20 + $0x3f0] sm:$0xf]  ;;  %v4081_v12 = vor.u32 %v4536_v44, %v4080_v42  ;;  %v3522_v44 = vld [vmem:[#allocation20 + $0x134] sm:$0xf0] }
 0x26d   :  { %v1071_v20 = vsub.f32 %v5181_v14, %v5192_v7  ;;  %v5199_v21 = vadd.f32 %v1038_v15, %v1026_v8  ;;  %v1014_v22 = vpop.f32.mrf.mxu0  ;;  %2683 = vmatpush.bf16.msrb.mxu2 %v4137_v0  ;;  %v3661_v8 = vor.u32 %v4431_v6, %v3660_v51  ;;  %v3885_v15 = vor.u32 %v4487_v9, %v3884_v40  ;;  %v4026_v9 = vld [vmem:[#allocation20 + $0x524] sm:$0xf0] }
 0x26e   :  { %v1070_v29 = vsub.f32 %v5183_v17, %v5195_v11  ;;  %v5203_v30 = vadd.f32 %v1012_v45, %v1000_v13  ;;  %v1027_v31 = vpop.f32.mrf.mxu1  ;;  %v4109_v22 = vor.u32 %v4543_v19, %v4108_v18  ;;  %v4250_v18 = vld [vmem:[#allocation20 + $0x6e4] sm:$0xf0] }
 0x26f   :  { %v1075_v36 = vmul.f32 %v1071_v20, %v1071_v20  ;;  %v1060_v37 = vrot.slane %v5199_v21, 4  ;;  %2658 = vmatpush.bf16.msrb.mxu0 %v3661_v8  ;;  %2671 = vmatpush.bf16.msrb.mxu1 %v3885_v15  ;;  %v3632_v31 = vld [vmem:[#allocation20 + $0x1f8] sm:$0xf]  ;;  %v4575_v15 = vld [vmem:[#allocation20 + $0x6cc] sm:$0xf] }
 0x270   :  { %v1074_v39 = vmul.f32 %v1070_v29, %v1070_v29  ;;  %v1054_v41 = vrot.slane %v5203_v30, 4  ;;  %2645 = vmatpush.bf16.msra.mxu3 %v3437_v5  ;;  %v3409_v29 = vor.u32 %v4368_v26, %v3408_v23  ;;  %v3633_v35 = vor.u32 %v4424_v32, %v3632_v31  ;;  %v4456_v23 = vld [vmem:[#allocation20 + $0x314] sm:$0xf] }
 0x271   :  { %v1084_v49 = vrot.slane %v1075_v36, 4  ;;  %v1061_v45 = vadd.f32 %v1060_v37, %v5199_v21  ;;  %2684 = vmatpush.bf16.msrb.mxu2 %v4109_v22  ;;  %v4480_v37 = vld [vmem:[#allocation20 + $0x3d0] sm:$0xf0]  ;;  %v3550_v22 = vld [vmem:[#allocation20 + $0x16c] sm:$0xf0] }
 0x272   :  { %v1078_v48 = vrot.slane %v1074_v39, 4  ;;  %v1055_v50 = vadd.f32 %v1054_v41, %v5203_v30 }
 0x273   :  { %v1085_v55 = vadd.f32 %v1084_v49, %v1075_v36  ;;  %v1062_v56 = vrot.slane %v1061_v45, 2  ;;  %v1001_v24 = vpop.f32.mrf.mxu3  ;;  %v3856_v36 = vld [vmem:[#allocation20 + $0x3b8] sm:$0xf]  ;;  %2659 = vmatpush.bf16.msrb.mxu0 %v3633_v35 }
 0x274   :  { %v1079_v61 = vadd.f32 %v1078_v48, %v1074_v39  ;;  %v1056_v62 = vrot.slane %v1055_v50, 2  ;;  %v1040_v63 = vpop.f32.mrf.mxu2  ;;  %2646 = vmatpush.bf16.msra.mxu3 %v3409_v29  ;;  %v3857_v41 = vor.u32 %v4480_v37, %v3856_v36  ;;  %v3604_v48 = vld [vmem:[#allocation20 + $0x1c0] sm:$0xf]  ;;  %v4512_v29 = vld [vmem:[#allocation20 + $0x4d4] sm:$0xf] }
 0x275   :  { %v1086_v3 = vrot.slane %v1085_v55, 2  ;;  %v1063_v4 = vadd.f32 %v1062_v56, %v1061_v45  ;;  %v4473_v56 = vld [vmem:[#allocation20 + $0x398] sm:$0xf0]  ;;  %2685 = vmatpush.bf16.msrb.mxu2 %v4081_v12  ;;  %v3605_v59 = vor.u32 %v4417_v54, %v3604_v48  ;;  %v4407_v63 = vld [vmem:[#allocation20 + $0x18c] sm:$0xf] }
 0x276   :  { %v1080_v57 = vrot.slane %v1079_v61, 2  ;;  %v1057_v25 = vadd.f32 %v1056_v62, %v1055_v50  ;;  %2672 = vmatpush.bf16.msrb.mxu1 %v3857_v41  ;;  %v4529_v62 = vld [vmem:[#allocation20 + $0x558] sm:$0xf0]  ;;  %v4222_v37 = vld [vmem:[#allocation20 + $0x6ac] sm:$0xf0] }
 0x277   :  { %v1087_v10 = vadd.f32 %v1086_v3, %v1085_v55  ;;  %v1064_v13 = vrot.slane %v1063_v4, 1  ;;  %v3828_v55 = vld [vmem:[#allocation20 + $0x380] sm:$0xf]  ;;  %v3578_v3 = vld [vmem:[#allocation20 + $0x1a4] sm:$0xf0]  ;;  %2660 = vmatpush.bf16.msrb.mxu0 %v3605_v59 }
 0x278   :  { %v1081_v16 = vadd.f32 %v1080_v57, %v1079_v61  ;;  %v1058_v20 = vrot.slane %v1057_v25, 1  ;;  %v3829_v60 = vor.u32 %v4473_v56, %v3828_v55  ;;  %v4052_v61 = vld [vmem:[#allocation20 + $0x540] sm:$0xf]  ;;  %2647 = vmatpush.bf16.msra.mxu3 %v3381_v53  ;;  %v3581_v6 = vor.u32 %v4407_v63, %v3578_v3  ;;  %v3802_v57 = vld [vmem:[#allocation20 + $0x364] sm:$0xf0] }
 0x279   :  { %v1088_v27 = vrot.slane %v1087_v10, 1  ;;  %v1065_v28 = vadd.f32 %v1064_v13, %v1063_v4  ;;  %v4053_v2 = vor.u32 %v4529_v62, %v4052_v61  ;;  %v4463_v4 = vld [vmem:[#allocation20 + $0x34c] sm:$0xf]  ;;  %v3746_v12 = vld [vmem:[#allocation20 + $0x2f4] sm:$0xf0] }
 0x27a   :  { %v1082_v33 = vrot.slane %v1081_v16, 1  ;;  %v1059_v34 = vadd.f32 %v1058_v20, %v1057_v25  ;;  %v4519_v25 = vld [vmem:[#allocation20 + $0x50c] sm:$0xf]  ;;  %2673 = vmatpush.bf16.msrb.mxu1 %v3829_v60  ;;  %v3805_v40 = vor.u32 %v4463_v4, %v3802_v57  ;;  %v4400_v20 = vld [vmem:[#allocation20 + $0x154] sm:$0xf] }
 0x27b   :  { %v1089_v38 = vadd.f32 %v1088_v27, %v1087_v10  ;;  %v5210_v39 = vmul.f32 %v1065_v28, %v5105_v43  ;;  %2686 = vmatpush.bf16.msrb.mxu2 %v4053_v2  ;;  %v4029_v13 = vor.u32 %v4519_v25, %v4026_v9  ;;  %v3553_v27 = vor.u32 %v4400_v20, %v3550_v22  ;;  %v3774_v28 = vld [vmem:[#allocation20 + $0x32c] sm:$0xf0]  ;;  %v4561_v56 = vld [vmem:[#allocation20 + $0x65c] sm:$0xf]  ;;  %v4386_v61 = vld [vmem:[#allocation20 + $0xe4] sm:$0xf] }
 0x27c   :  { %v1083_v49 = vadd.f32 %v1082_v33, %v1081_v16  ;;  %v5213_v45 = vmul.f32 %v1059_v34, %v5105_v43  ;;  %2692 = vmatpush.bf16.msrb.mxu3 %v3581_v6  ;;  %2705 = vmatpush.bf16.msra.mxu0 %v3805_v40  ;;  %v4253_v16 = vor.u32 %v4575_v15, %v4250_v18  ;;  %v3998_v33 = vld [vmem:[#allocation20 + $0x4ec] sm:$0xf0]  ;;  %v4568_v34 = vld [vmem:[#allocation20 + $0x694] sm:$0xf]  ;;  %v3494_v62 = vld [vmem:[#allocation20 + $0xfc] sm:$0xf0] }
 0x27d   :  { %v1103_v50 = vmul.f32 %v1089_v38, %v5105_v43  ;;  %v1073_v52 = vsub.f32 %v5199_v21, %v5210_v39  ;;  %v3777_v32 = vor.u32 %v4456_v23, %v3774_v28  ;;  %v4001_v36 = vor.u32 %v4512_v29, %v3998_v33  ;;  %v4393_v38 = vld [vmem:[#allocation20 + $0x11c] sm:$0xf]  ;;  %v4442_v3 = vld [vmem:[#allocation20 + $0x2a4] sm:$0xf]  ;;  %v3718_v4 = vld [vmem:[#allocation20 + $0x2bc] sm:$0xf0] }
 0x27e   :  { %v1102_v24 = vmul.f32 %v1083_v49, %v5105_v43  ;;  %v1072_v58 = vsub.f32 %v5203_v30, %v5213_v45  ;;  %2718 = vmatpush.bf16.msra.mxu1 %v4029_v13  ;;  %v4225_v42 = vor.u32 %v4568_v34, %v4222_v37  ;;  %v4449_v49 = vld [vmem:[#allocation20 + $0x2dc] sm:$0xf]  ;;  %v3525_v48 = vor.u32 %v4393_v38, %v3522_v44  ;;  %v4554_v40 = vld [vmem:[#allocation20 + $0x624] sm:$0xf]  ;;  %v4166_v13 = vld [vmem:[#allocation20 + $0x63c] sm:$0xf0] }
 0x27f   :  { %v5221_v0 = vadd.f32 1e-05, %v1103_v50  ;;  %v1077_v1 = vmul.f32 %v1073_v52, %v1073_v52  ;;  %2731 = vmatpush.bf16.msra.mxu2 %v4253_v16  ;;  %v4505_v50 = vld [vmem:[#allocation20 + $0x49c] sm:$0xf]  ;;  %v3970_v52 = vld [vmem:[#allocation20 + $0x4b4] sm:$0xf0]  ;;  %v3749_v55 = vor.u32 %v4449_v49, %v3746_v12  ;;  %v3497_v2 = vor.u32 %v4386_v61, %v3494_v62 }
 0x280   :  { %v5223_v5 = vadd.f32 1e-05, %v1102_v24  ;;  %v1076_v51 = vmul.f32 %v1072_v58, %v1072_v58  ;;  %2693 = vmatpush.bf16.msrb.mxu3 %v3553_v27  ;;  %2706 = vmatpush.bf16.msra.mxu0 %v3777_v32  ;;  %v4194_v24 = vld [vmem:[#allocation20 + $0x674] sm:$0xf0]  ;;  %v3973_v59 = vor.u32 %v4505_v50, %v3970_v52  ;;  %v3721_v25 = vor.u32 %v4442_v3, %v3718_v4  ;;  %v4379_v15 = vld [vmem:[#allocation20 + $0xac] sm:$0xf] }
 0x281   :  { %v1096_v8 = vrot.slane %v1077_v1, 4  ;;  %4613 = vrsqrt.f32 %v5221_v0  ;;  %v4197_v60 = vor.u32 %v4561_v56, %v4194_v24  ;;  %v3466_v16 = vld [vmem:[#allocation20 + $0xc4] sm:$0xf0]  ;;  %v4435_v20 = vld [vmem:[#allocation20 + $0x26c] sm:$0xf]  ;;  %vm1127_vm14 = vweird.f32 %v5221_v0 }
 0x282   :  { %v1090_v10 = vrot.slane %v1076_v51, 4  ;;  %4615 = vrsqrt.f32 %v5223_v5  ;;  %2719 = vmatpush.bf16.msra.mxu1 %v4001_v36  ;;  %v3690_v27 = vld [vmem:[#allocation20 + $0x284] sm:$0xf0]  ;;  %v4491_v32 = vld [vmem:[#allocation20 + $0x42c] sm:$0xf]  ;;  %vm1117_vm15 = vweird.f32 %v5223_v5 }
 0x283   :  { %v1097_v19 = vadd.f32 %v1096_v8, %v1077_v1  ;;  %2732 = vmatpush.bf16.msra.mxu2 %v4225_v42  ;;  %v3942_v8 = vld [vmem:[#allocation20 + $0x47c] sm:$0xf0]  ;;  %v3914_v33 = vld [vmem:[#allocation20 + $0x444] sm:$0xf0]  ;;  %v4547_v34 = vld [vmem:[#allocation20 + $0x5ec] sm:$0xf] }
 0x284   :  { %v1091_v26 = vadd.f32 %v1090_v10, %v1076_v51  ;;  %2694 = vmatpush.bf16.msrb.mxu3 %v3525_v48  ;;  %2707 = vmatpush.bf16.msra.mxu0 %v3749_v55  ;;  %v4498_v51 = vld [vmem:[#allocation20 + $0x464] sm:$0xf]  ;;  %v4372_v36 = vld [vmem:[#allocation20 + $0x74] sm:$0xf]  ;;  %v3438_v38 = vld [vmem:[#allocation20 + $0x8c] sm:$0xf0] }
 0x285   :  { %v1098_v31 = vrot.slane %v1097_v19, 2  ;;  %v3945_v10 = vor.u32 %v4498_v51, %v3942_v8  ;;  %v3662_v42 = vld [vmem:[#allocation20 + $0x24c] sm:$0xf0]  ;;  %v3441_v49 = vor.u32 %v4372_v36, %v3438_v38  ;;  %v4365_v24 = vld [vmem:[#allocation20 + $0x3c] sm:$0xf] }
 0x286   :  { %v1092_v35 = vrot.slane %v1091_v26, 2  ;;  %2720 = vmatpush.bf16.msra.mxu1 %v3973_v59  ;;  %v3886_v48 = vld [vmem:[#allocation20 + $0x40c] sm:$0xf0]  ;;  %v4421_v59 = vld [vmem:[#allocation20 + $0x1fc] sm:$0xf] }
 0x287   :  { %v1099_v41 = vadd.f32 %v1098_v31, %v1097_v19  ;;  %v5227_v47 = vpop.eup %4613  ;;  %2733 = vmatpush.bf16.msra.mxu2 %v4197_v60  ;;  %v4169_v19 = vor.u32 %v4554_v40, %v4166_v13  ;;  %v3693_v31 = vor.u32 %v4435_v20, %v3690_v27  ;;  %v4110_v55 = vld [vmem:[#allocation20 + $0x5cc] sm:$0xf0]  ;;  %v3634_v61 = vld [vmem:[#allocation20 + $0x214] sm:$0xf0]  ;;  %v4477_v62 = vld [vmem:[#allocation20 + $0x3bc] sm:$0xf] }
 0x288   :  { %v1093_v46 = vadd.f32 %v1092_v35, %v1091_v26  ;;  %v5229_v53 = vpop.eup %4615  ;;  %v1122_v63 = vmul.f32 %v5227_v47, %v5221_v0  ;;  %2695 = vmatpush.bf16.msrb.mxu3 %v3497_v2  ;;  %2708 = vmatpush.bf16.msra.mxu0 %v3721_v25  ;;  %v3469_v26 = vor.u32 %v4379_v15, %v3466_v16  ;;  %v4138_v35 = vld [vmem:[#allocation20 + $0x604] sm:$0xf0]  ;;  %v4533_v4 = vld [vmem:[#allocation20 + $0x57c] sm:$0xf]  ;;  %v4082_v51 = vld [vmem:[#allocation20 + $0x594] sm:$0xf0]  ;;  %vm1128_vm12 = vweird.f32 %v5227_v47 }
 0x289   :  { %v1100_v54 = vrot.slane %v1099_v41, 1  ;;  %v1112_v6 = vmul.f32 %v5229_v53, %v5223_v5  ;;  %v4141_v37 = vor.u32 %v4547_v34, %v4138_v35  ;;  %v3637_v3 = vor.u32 %v4421_v59, %v3634_v61  ;;  %v3606_v16 = vld [vmem:[#allocation20 + $0x1dc] sm:$0xf0]  ;;  %v4470_v27 = vld [vmem:[#allocation20 + $0x384] sm:$0xf]  ;;  %vm5258_vm0 = vmor %vm1127_vm14, %vm1128_vm12 }
 0x28a   :  { %v1094_v58 = vrot.slane %v1093_v46, 1  ;;  %v1123_v22 = vmul.f32 %v5227_v47, %v1122_v63  ;;  %2721 = vmatpush.bf16.msra.mxu1 %v3945_v10  ;;  %v3858_v63 = vld [vmem:[#allocation20 + $0x3d4] sm:$0xf0]  ;;  %v4085_v40 = vor.u32 %v4533_v4, %v4082_v51  ;;  %v3382_v10 = vld [vmem:[#allocation20 + $0x1c] sm:$0xf0]  ;;  %vm1118_vm13 = vweird.f32 %v5229_v53 }
 0x28b   :  { %v1101_v1 = vadd.f32 %v1100_v54, %v1099_v41  ;;  %v1113_v28 = vmul.f32 %v5229_v53, %v1112_v6  ;;  %2734 = vmatpush.bf16.msra.mxu2 %v4169_v19  ;;  %v4428_v41 = vld [vmem:[#allocation20 + $0x234] sm:$0xf]  ;;  %v3861_v25 = vor.u32 %v4477_v62, %v3858_v63  ;;  %v4414_v19 = vld [vmem:[#allocation20 + $0x1c4] sm:$0xf]  ;;  %vm5269_vm3 = vmor %vm1117_vm15, %vm1118_vm13 }
 0x28c   :  { %v1095_v57 = vadd.f32 %v1094_v58, %v1093_v46  ;;  %2696 = vmatpush.bf16.msrb.mxu3 %v3469_v26  ;;  %v1124_v44 = vmul.f32 0.5, %v1123_v22  ;;  %2709 = vmatpush.bf16.msra.mxu0 %v3693_v31  ;;  %v3665_v12 = vor.u32 %v4428_v41, %v3662_v42  ;;  %v4484_v46 = vld [vmem:[#allocation20 + $0x3f4] sm:$0xf]  ;;  %v3410_v58 = vld [vmem:[#allocation20 + $0x54] sm:$0xf0]  ;;  %v3609_v26 = vor.u32 %v4414_v19, %v3606_v16 }
 0x28d   :  { %v1105_v9 = vmul.f32 %v1101_v1, %v5105_v43  ;;  %v1114_v50 = vmul.f32 0.5, %v1113_v28  ;;  %v3889_v52 = vor.u32 %v4484_v46, %v3886_v48  ;;  %v4540_v54 = vld [vmem:[#allocation20 + $0x5b4] sm:$0xf]  ;;  %v3413_v60 = vor.u32 %v4365_v24, %v3410_v58  ;;  %v3830_v28 = vld [vmem:[#allocation20 + $0x39c] sm:$0xf0] }
 0x28e   :  { %v1104_v18 = vmul.f32 %v1095_v57, %v5105_v43  ;;  %v3917_v43 = vor.u32 %v4491_v32, %v3914_v33  ;;  %v4113_v56 = vor.u32 %v4540_v54, %v4110_v55  ;;  %v1125_v2 = vsub.f32 1.5, %v1124_v44  ;;  %v4526_v31 = vld [vmem:[#allocation20 + $0x544] sm:$0xf]  ;;  %v4411_v16 = vld [vmem:[#allocation20 + $0x1a8] sm:$0xf0] }
 0x28f   :  { %v5238_v23 = vadd.f32 1e-05, %v1105_v9  ;;  %2735 = vmatpush.bf16.msra.mxu2 %v4141_v37  ;;  %v4358_v9 = vld [vmem:[#allocation20 + $0x4] sm:$0xf]  ;;  %v1115_v13 = vsub.f32 1.5, %v1114_v50  ;;  %v3833_v33 = vor.u32 %v4470_v27, %v3830_v28 }
 0x290   :  { %v5241_v29 = vadd.f32 1e-05, %v1104_v18  ;;  %2722 = vmatpush.bf16.msra.mxu1 %v3917_v43  ;;  %2697 = vmatpush.bf16.msrb.mxu3 %v3441_v49  ;;  %v3385_v18 = vor.u32 %v4358_v9, %v3382_v10  ;;  %v1126_v20 = vmul.f32 %v5227_v47, %v1125_v2  ;;  %v4054_v43 = vld [vmem:[#allocation20 + $0x55c] sm:$0xf0]  ;;  %v3584_v10 = vld [vmem:[#allocation20 + $0x190] sm:$0xf] }
 0x291   :  { %4617 = vrsqrt.f32 %v5238_v23  ;;  %2710 = vmatpush.bf16.msra.mxu0 %v3665_v12  ;;  %v4057_v35 = vor.u32 %v4526_v31, %v4054_v43  ;;  %v1116_v41 = vmul.f32 %v5229_v53, %v1115_v13  ;;  %vm1147_vm4 = vweird.f32 %v5238_v23  ;;  %v4256_v27 = vld [vmem:[#allocation20 + $0x6d0] sm:$0xf]  ;;  %v3780_v5 = vld [vmem:[#allocation20 + $0x318] sm:$0xf] }
 0x292   :  { %4619 = vrsqrt.f32 %v5241_v29  ;;  %v1130_v38 = vsel %vm5258_vm0, %v5227_v47, %v1126_v20  ;;  %vm1137_vm5 = vweird.f32 %v5241_v29  ;;  %v3808_v20 = vld [vmem:[#allocation20 + $0x350] sm:$0xf] }
 0x293   :  { %2736 = vmatpush.bf16.msra.mxu2 %v4113_v56  ;;  %v1155_v47 = vrot.slane %v1130_v38, 7  ;;  %v1120_v12 = vsel %vm5269_vm3, %v5229_v53, %v1116_v41  ;;  %v4404_v38 = vld [vmem:[#allocation20 + $0x170] sm:$0xf0] }
 0x294   :  { %2723 = vmatpush.bf16.msra.mxu1 %v3889_v52  ;;  %2698 = vmatpush.bf16.msrb.mxu3 %v3413_v60 }
 0x295   :  { %2711 = vmatpush.bf16.msra.mxu0 %v3637_v3  ;;  %v1158_v52 = vsel %vm513_vm8, %v1120_v12, %v1155_v47  ;;  %v1165_v3 = vld [vmem:[#allocation19] sm:$0xf]  ;;  %v4516_v47 = vld [vmem:[#allocation20 + $0x4f0] sm:$0xf0] }
 0x296   :  { %v4572_v12 = vld [vmem:[#allocation20 + $0x6b0] sm:$0xf0] }
 0x297   :  { %v5245_v1 = vpop.eup %4617  ;;  %2737 = vmatpush.bf16.msra.mxu2 %v4085_v40 }
 0x298   :  { %v4620_v6 = vpop.eup %4619  ;;  %v1142_v57 = vmul.f32 %v5245_v1, %v5238_v23  ;;  %2724 = vmatpush.bf16.msra.mxu1 %v3861_v25  ;;  %vm1148_vm1 = vweird.f32 %v5245_v1  ;;  %2699 = vmatpush.bf16.msrb.mxu3 %v3385_v18  ;;  %v1106_v23 = vld [vmem:[#allocation17] sm:$0xf] }
 0x299   :  { %v1132_v8 = vmul.f32 %v4620_v6, %v5241_v29  ;;  %vm1138_vm2 = vweird.f32 %v4620_v6  ;;  %2712 = vmatpush.bf16.msra.mxu0 %v3609_v26  ;;  %vm1149_vm6 = vmor %vm1147_vm4, %vm1148_vm1  ;;  %v4032_v26 = vld [vmem:[#allocation20 + $0x510] sm:$0xf] }
 0x29a   :  { %v1143_v15 = vmul.f32 %v5245_v1, %v1142_v57  ;;  %vm1139_vm7 = vmor %vm1137_vm5, %vm1138_vm2 }
 0x29b   :  { %v1133_v22 = vmul.f32 %v4620_v6, %v1132_v8  ;;  %2738 = vmatpush.bf16.msra.mxu2 %v4057_v35 }
 0x29c   :  { %v1144_v32 = vmul.f32 0.5, %v1143_v15  ;;  %2725 = vmatpush.bf16.msra.mxu1 %v3833_v33 }
 0x29d   :  { %v1134_v34 = vmul.f32 0.5, %v1133_v22  ;;  %v4467_v22 = vld [vmem:[#allocation20 + $0x368] sm:$0xf0] }
 0x29e   :  { %v1145_v37 = vsub.f32 1.5, %v1144_v32  ;;  %v3585_v32 = vor.u32 %v4411_v16, %v3584_v10  ;;  %v3809_v33 = vor.u32 %v4467_v22, %v3808_v20  ;;  %v3920_v10 = vld [vmem:[#allocation20 + $0x430] sm:$0xf]  ;;  %v3444_v20 = vld [vmem:[#allocation20 + $0x78] sm:$0xf] }
 0x29f   :  { %v1135_v0 = vsub.f32 1.5, %v1134_v34  ;;  %v4376_v22 = vld [vmem:[#allocation20 + $0x90] sm:$0xf0] }
 0x2a0   :  { %v1146_v42 = vmul.f32 %v5245_v1, %v1145_v37  ;;  %v3556_v37 = vld [vmem:[#allocation20 + $0x158] sm:$0xf] }
 0x2a1   :  { %v1136_v44 = vmul.f32 %v4620_v6, %v1135_v0 }
 0x2a2   :  { %v1150_v49 = vsel %vm1149_vm6, %v5245_v1, %v1146_v42  ;;  %v4460_v42 = vld [vmem:[#allocation20 + $0x330] sm:$0xf0] }
 0x2a3   :  { %v1140_v46 = vsel %vm1139_vm7, %v4620_v6, %v1136_v44  ;;  %v1157_v50 = vrot.slane %v1150_v49, 5  ;;  %v4004_v44 = vld [vmem:[#allocation20 + $0x4d8] sm:$0xf] }
 0x2a4   :  { %v1156_v48 = vrot.slane %v1140_v46, 6  ;;  %v4228_v49 = vld [vmem:[#allocation20 + $0x698] sm:$0xf]  ;;  %v3557_v46 = vor.u32 %v4404_v38, %v3556_v37  ;;  %v3416_v37 = vld [vmem:[#allocation20 + $0x40] sm:$0xf] }
 0x2a5   :  { %v4369_v38 = vld [vmem:[#allocation20 + $0x58] sm:$0xf0] }
 0x2a6   :  { %v1160_v29 = vsel %vm1159_vm9, %v1156_v48, %v1157_v50  ;;  %v3781_v48 = vor.u32 %v4460_v42, %v3780_v5  ;;  %v3528_v50 = vld [vmem:[#allocation20 + $0x120] sm:$0xf]  ;;  %v4425_v42 = vld [vmem:[#allocation20 + $0x218] sm:$0xf0] }
 0x2a7   :  { %v1162_v54 = vsel %vm1161_vm10, %v1158_v52, %v1160_v29  ;;  %v4005_v52 = vor.u32 %v4516_v47, %v4004_v44  ;;  %v4229_v29 = vor.u32 %v4572_v12, %v4228_v49  ;;  %v3640_v5 = vld [vmem:[#allocation20 + $0x200] sm:$0xf]  ;;  %v4481_v47 = vld [vmem:[#allocation20 + $0x3d8] sm:$0xf0] }
 0x2a8   :  { %v1164_v55 = vmul.f32 %v1162_v54, %v1106_v23  ;;  %v4397_v23 = vld [vmem:[#allocation20 + $0x138] sm:$0xf0]  ;;  %v3752_v54 = vld [vmem:[#allocation20 + $0x2e0] sm:$0xf] }
 0x2a9   :  { %v3864_v44 = vld [vmem:[#allocation20 + $0x3c0] sm:$0xf]  ;;  %v4537_v12 = vld [vmem:[#allocation20 + $0x598] sm:$0xf0] }
 0x2aa   :  { %v1167_v56 = vperm.slane %v1164_v55, 0  ;;  %v1168_v24 = vperm.slane %v1164_v55, 1  ;;  %v1169_v58 = vperm.slane %v1164_v55, 2  ;;  %v1170_v59 = vperm.slane %v1164_v55, 3  ;;  %v4453_v55 = vld [vmem:[#allocation20 + $0x2f8] sm:$0xf0] }
 0x2ab   :  { %v4088_v49 = vld [vmem:[#allocation20 + $0x580] sm:$0xf] }
 0x2ac   :  { %v1176_v60 = vmul.f32 %v1168_v24, %v5192_v7  ;;  %v1177_v53 = vmul.f32 %v1169_v58, %v5213_v45  ;;  %v1178_v61 = vmul.f32 %v1170_v59, %v5210_v39  ;;  %v1175_v62 = vmul.f32 %v1167_v56, %v5195_v11 }
 0x2ad   :  { %v1193_v25 = vmul.f32 %v1169_v58, %v5203_v30  ;;  %v1194_v7 = vmul.f32 %v1170_v59, %v5199_v21  ;;  %v1191_v45 = vmul.f32 %v1167_v56, %v5183_v17  ;;  %v1192_v39 = vmul.f32 %v1168_v24, %v5181_v14  ;;  %v4523_v30 = vld [vmem:[#allocation20 + $0x528] sm:$0xf0]  ;;  %v3976_v56 = vld [vmem:[#allocation20 + $0x4a0] sm:$0xf]  ;;  %v4509_v24 = vld [vmem:[#allocation20 + $0x4b8] sm:$0xf0] }
 0x2ae   :  { %v1183_v63 = vrot.slane %v1176_v60, 7  ;;  %v1184_v1 = vrot.slane %v1177_v53, 6  ;;  %v1185_v2 = vrot.slane %v1178_v61, 5  ;;  %v4579_v14 = vld [vmem:[#allocation20 + $0x6e8] sm:$0xf0]  ;;  %v4033_v0 = vor.u32 %v4523_v30, %v4032_v26 }
 0x2af   :  { %v4257_v41 = vor.u32 %v4579_v14, %v4256_v27  ;;  %v4200_v58 = vld [vmem:[#allocation20 + $0x660] sm:$0xf]  ;;  %v4565_v59 = vld [vmem:[#allocation20 + $0x678] sm:$0xf0]  ;;  %v3529_v60 = vor.u32 %v4397_v23, %v3528_v50  ;;  %v3753_v53 = vor.u32 %v4453_v55, %v3752_v54  ;;  %v3500_v61 = vld [vmem:[#allocation20 + $0xe8] sm:$0xf]  ;;  %v3641_v50 = vor.u32 %v4425_v42, %v3640_v5 }
 0x2b0   :  { %v1186_v4 = vsel %vm513_vm8, %v1175_v62, %v1183_v63  ;;  %v1187_v51 = vsel %vm1159_vm9, %v1184_v1, %v1185_v2  ;;  %v4390_v62 = vld [vmem:[#allocation20 + $0x100] sm:$0xf0]  ;;  %v3977_v63 = vor.u32 %v4509_v24, %v3976_v56  ;;  %v4201_v1 = vor.u32 %v4565_v59, %v4200_v58  ;;  %v3724_v2 = vld [vmem:[#allocation20 + $0x2a8] sm:$0xf]  ;;  %v3668_v27 = vld [vmem:[#allocation20 + $0x238] sm:$0xf] }
 0x2b1   :  { %v1188_v6 = vsel %vm1161_vm10, %v1186_v4, %v1187_v51  ;;  %v3948_v4 = vld [vmem:[#allocation20 + $0x468] sm:$0xf]  ;;  %v4502_v51 = vld [vmem:[#allocation20 + $0x480] sm:$0xf0]  ;;  %v4544_v14 = vld [vmem:[#allocation20 + $0x5d0] sm:$0xf0]  ;;  %v3865_v54 = vor.u32 %v4481_v47, %v3864_v44  ;;  %v4089_v55 = vor.u32 %v4537_v12, %v4088_v49 }
 0x2b2   :  { %v1190_v57 = vsub.f32 %v1165_v3, %v1188_v6  ;;  %v4446_v3 = vld [vmem:[#allocation20 + $0x2c0] sm:$0xf0]  ;;  %v4172_v6 = vld [vmem:[#allocation20 + $0x628] sm:$0xf]  ;;  %v4443_v5 = vld [vmem:[#allocation20 + $0x2ac] sm:$0xf] }
 0x2b3   :  { %v4362_v23 = vld [vmem:[#allocation20 + $0x20] sm:$0xf0]  ;;  %v3836_v56 = vld [vmem:[#allocation20 + $0x388] sm:$0xf]  ;;  %v4499_v44 = vld [vmem:[#allocation20 + $0x46c] sm:$0xf] }
 0x2b4   :  { %v1199_v11 = vperm.slane %v1190_v57, 3  ;;  %v1196_v8 = vperm.slane %v1190_v57, 0  ;;  %v1197_v40 = vperm.slane %v1190_v57, 1  ;;  %v1198_v9 = vperm.slane %v1190_v57, 2  ;;  %v4558_v57 = vld [vmem:[#allocation20 + $0x640] sm:$0xf0] }
 0x2b5   :  { %v4474_v24 = vld [vmem:[#allocation20 + $0x3a0] sm:$0xf0]  ;;  %v4060_v58 = vld [vmem:[#allocation20 + $0x548] sm:$0xf]  ;;  %v4555_v49 = vld [vmem:[#allocation20 + $0x62c] sm:$0xf] }
 0x2b6   :  { %v1207_v13 = vadd.f32 %v1199_v11, %v1194_v7  ;;  %v1204_v15 = vadd.f32 %v1196_v8, %v1191_v45  ;;  %v1205_v18 = vadd.f32 %v1197_v40, %v1192_v39  ;;  %v1206_v19 = vadd.f32 %v1198_v9, %v1193_v25  ;;  %v3472_v45 = vld [vmem:[#allocation20 + $0xb0] sm:$0xf]  ;;  %v4383_v39 = vld [vmem:[#allocation20 + $0xc8] sm:$0xf0]  ;;  %v4530_v59 = vld [vmem:[#allocation20 + $0x560] sm:$0xf0] }
 0x2b7   :  { %v3501_v25 = vor.u32 %v4390_v62, %v3500_v61  ;;  %v3725_v7 = vor.u32 %v4446_v3, %v3724_v2  ;;  %v3949_v11 = vor.u32 %v4502_v51, %v3948_v4  ;;  %v4173_v8 = vor.u32 %v4558_v57, %v4172_v6  ;;  %v3696_v40 = vld [vmem:[#allocation20 + $0x270] sm:$0xf]  ;;  %v4439_v9 = vld [vmem:[#allocation20 + $0x288] sm:$0xf0]  ;;  %v4464_v61 = vld [vmem:[#allocation20 + $0x354] sm:$0xf] }
 0x2b8   :  { %v1211_v21 = vmax.f32 %v1207_v13, 0.0  ;;  %v1208_v28 = vmax.f32 %v1204_v15, 0.0  ;;  %v1209_v17 = vmax.f32 %v1205_v18, 0.0  ;;  %v1210_v31 = vmax.f32 %v1206_v19, 0.0  ;;  %v4495_v13 = vld [vmem:[#allocation20 + $0x448] sm:$0xf0] }
 0x2b9   :  { %v4144_v15 = vld [vmem:[#allocation20 + $0x5f0] sm:$0xf]  ;;  %v4551_v18 = vld [vmem:[#allocation20 + $0x608] sm:$0xf0]  ;;  %v3473_v19 = vor.u32 %v4383_v39, %v3472_v45  ;;  %v3697_v16 = vor.u32 %v4439_v9, %v3696_v40  ;;  %v3921_v26 = vor.u32 %v4495_v13, %v3920_v10  ;;  %v4576_v4 = vld [vmem:[#allocation20 + $0x6d4] sm:$0xf]  ;;  %v3837_v6 = vor.u32 %v4474_v24, %v3836_v56 }
 0x2ba   :  { %v5294_v43 = vpack.c.bf16 %v1211_v21, %v1211_v21  ;;  %v5296_v34 = vpack.c.bf16 %v1208_v28, %v1208_v28  ;;  %v5298_v35 = vpack.c.bf16 %v1209_v17, %v1209_v17  ;;  %v5300_v36 = vpack.c.bf16 %v1210_v31, %v1210_v31  ;;  %v4432_v21 = vld [vmem:[#allocation20 + $0x250] sm:$0xf0]  ;;  %v3892_v28 = vld [vmem:[#allocation20 + $0x3f8] sm:$0xf]  ;;  %v3810_v62 = vld [vmem:[#allocation20 + $0x36c] sm:$0xf0] }
 0x2bb   :  { %v4145_v30 = vor.u32 %v4551_v18, %v4144_v15  ;;  %v4488_v17 = vld [vmem:[#allocation20 + $0x410] sm:$0xf0]  ;;  %v4116_v31 = vld [vmem:[#allocation20 + $0x5b8] sm:$0xf]  ;;  %v4034_v3 = vld [vmem:[#allocation20 + $0x52c] sm:$0xf0]  ;;  %v4061_v57 = vor.u32 %v4530_v59, %v4060_v58 }
 0x2bc   :  { %2648 = vmatmul.bf16.vlgmr.msra.gmra.mxu3 %v5296_v34  ;;  %2661 = vmatmul.bf16.vlgmr.msrb.gmra.mxu0 %v5298_v35  ;;  %v4258_v51 = vld [vmem:[#allocation20 + $0x6ec] sm:$0xf0]  ;;  %v4401_v45 = vld [vmem:[#allocation20 + $0x15c] sm:$0xf]  ;;  %v3558_v39 = vld [vmem:[#allocation20 + $0x174] sm:$0xf0] }
 0x2bd   :  { %2674 = vmatmul.bf16.vlgmr.msrb.gmra.mxu1 %v5300_v36  ;;  %2687 = vmatmul.bf16.vlgmr.msrb.gmra.mxu2 %v5294_v43  ;;  %v4457_v40 = vld [vmem:[#allocation20 + $0x31c] sm:$0xf]  ;;  %v3782_v9 = vld [vmem:[#allocation20 + $0x334] sm:$0xf0]  ;;  %v3726_v42 = vld [vmem:[#allocation20 + $0x2c4] sm:$0xf0] }
 0x2be   :  { %2744 = vmatpush.bf16.msra.mxu3 %v3585_v32  ;;  %2757 = vmatpush.bf16.msrb.mxu0 %v3809_v33  ;;  %v3445_v32 = vor.u32 %v4376_v22, %v3444_v20  ;;  %v3669_v33 = vor.u32 %v4432_v21, %v3668_v27  ;;  %v4513_v10 = vld [vmem:[#allocation20 + $0x4dc] sm:$0xf]  ;;  %v4006_v13 = vld [vmem:[#allocation20 + $0x4f4] sm:$0xf0]  ;;  %v4394_v20 = vld [vmem:[#allocation20 + $0x124] sm:$0xf] }
 0x2bf   :  { %2770 = vmatpush.bf16.msrb.mxu1 %v4033_v0  ;;  %2783 = vmatpush.bf16.msrb.mxu2 %v4257_v41  ;;  %v3893_v0 = vor.u32 %v4488_v17, %v3892_v28  ;;  %v4117_v41 = vor.u32 %v4544_v14, %v4116_v31  ;;  %v4569_v15 = vld [vmem:[#allocation20 + $0x69c] sm:$0xf]  ;;  %v4230_v18 = vld [vmem:[#allocation20 + $0x6b4] sm:$0xf0]  ;;  %v3530_v22 = vld [vmem:[#allocation20 + $0x13c] sm:$0xf0] }
 0x2c0   :  { %v4450_v27 = vld [vmem:[#allocation20 + $0x2e4] sm:$0xf]  ;;  %v3754_v21 = vld [vmem:[#allocation20 + $0x2fc] sm:$0xf0]  ;;  %v3950_v47 = vld [vmem:[#allocation20 + $0x484] sm:$0xf0] }
 0x2c1   :  { %v4506_v28 = vld [vmem:[#allocation20 + $0x4a4] sm:$0xf]  ;;  %v3978_v17 = vld [vmem:[#allocation20 + $0x4bc] sm:$0xf0]  ;;  %v4174_v12 = vld [vmem:[#allocation20 + $0x644] sm:$0xf0] }
 0x2c2   :  { %2745 = vmatpush.bf16.msra.mxu3 %v3557_v46  ;;  %2758 = vmatpush.bf16.msrb.mxu0 %v3781_v48  ;;  %v3388_v46 = vld [vmem:[#allocation20 + $0x8] sm:$0xf]  ;;  %v3417_v48 = vor.u32 %v4369_v38, %v3416_v37  ;;  %v4562_v31 = vld [vmem:[#allocation20 + $0x664] sm:$0xf]  ;;  %v4202_v14 = vld [vmem:[#allocation20 + $0x67c] sm:$0xf0] }
 0x2c3   :  { %2771 = vmatpush.bf16.msrb.mxu1 %v4005_v52  ;;  %2784 = vmatpush.bf16.msrb.mxu2 %v4229_v29  ;;  %v3612_v52 = vld [vmem:[#allocation20 + $0x1c8] sm:$0xf]  ;;  %v4418_v29 = vld [vmem:[#allocation20 + $0x1e0] sm:$0xf0]  ;;  %v4387_v37 = vld [vmem:[#allocation20 + $0xec] sm:$0xf] }
 0x2c4   :  { %v3613_v2 = vor.u32 %v4418_v29, %v3612_v52  ;;  %v3502_v38 = vld [vmem:[#allocation20 + $0x104] sm:$0xf0]  ;;  %v3953_v52 = vor.u32 %v4499_v44, %v3950_v47  ;;  %v4177_v29 = vor.u32 %v4555_v49, %v4174_v12  ;;  %v4492_v56 = vld [vmem:[#allocation20 + $0x434] sm:$0xf]  ;;  %v3922_v24 = vld [vmem:[#allocation20 + $0x44c] sm:$0xf0] }
 0x2c5   :  { %v4548_v58 = vld [vmem:[#allocation20 + $0x5f4] sm:$0xf]  ;;  %v4146_v59 = vld [vmem:[#allocation20 + $0x60c] sm:$0xf0]  ;;  %v4264_v44 = vld [vmem:[#allocation20 + $0x6d8] sm:$0xf] }
 0x2c6   :  { %2746 = vmatpush.bf16.msra.mxu3 %v3529_v60  ;;  %2759 = vmatpush.bf16.msrb.mxu0 %v3753_v53  ;;  %v4408_v60 = vld [vmem:[#allocation20 + $0x194] sm:$0xf]  ;;  %v3586_v53 = vld [vmem:[#allocation20 + $0x1ac] sm:$0xf0] }
 0x2c7   :  { %2772 = vmatpush.bf16.msrb.mxu1 %v3977_v63  ;;  %2785 = vmatpush.bf16.msrb.mxu2 %v4201_v1  ;;  %v4520_v63 = vld [vmem:[#allocation20 + $0x514] sm:$0xf]  ;;  %v3389_v1 = vor.u32 %v4362_v23, %v3388_v46  ;;  %v3505_v46 = vor.u32 %v4387_v37, %v3502_v38  ;;  %v3474_v23 = vld [vmem:[#allocation20 + $0xcc] sm:$0xf0]  ;;  %v3816_v37 = vld [vmem:[#allocation20 + $0x358] sm:$0xf] }
 0x2c8   :  { %v4468_v38 = vld [vmem:[#allocation20 + $0x370] sm:$0xf0] }
 0x2c9   :  { %v4580_v47 = vld [vmem:[#allocation20 + $0x6f0] sm:$0xf0] }
 0x2ca   :  { %2747 = vmatpush.bf16.msra.mxu3 %v3501_v25  ;;  %2760 = vmatpush.bf16.msrb.mxu0 %v3725_v7  ;;  %v3589_v25 = vor.u32 %v4408_v60, %v3586_v53  ;;  %v3813_v7 = vor.u32 %v4464_v61, %v3810_v62  ;;  %v4373_v61 = vld [vmem:[#allocation20 + $0x7c] sm:$0xf]  ;;  %v3446_v62 = vld [vmem:[#allocation20 + $0x94] sm:$0xf0] }
 0x2cb   :  { %2773 = vmatpush.bf16.msrb.mxu1 %v3949_v11  ;;  %2786 = vmatpush.bf16.msrb.mxu2 %v4173_v8  ;;  %v4037_v11 = vor.u32 %v4520_v63, %v4034_v3  ;;  %v4261_v8 = vor.u32 %v4576_v4, %v4258_v51  ;;  %v3925_v63 = vor.u32 %v4492_v56, %v3922_v24  ;;  %v3670_v3 = vld [vmem:[#allocation20 + $0x254] sm:$0xf0]  ;;  %v4485_v4 = vld [vmem:[#allocation20 + $0x3fc] sm:$0xf]  ;;  %v4012_v56 = vld [vmem:[#allocation20 + $0x4e0] sm:$0xf] }
 0x2cc   :  { %2700 = vmatmul.bf16.vlgmr.msrb.gmra.mxu3 %v5296_v34  ;;  %2713 = vmatmul.bf16.vlgmr.msra.gmra.mxu0 %v5298_v35  ;;  %v3894_v51 = vld [vmem:[#allocation20 + $0x414] sm:$0xf0]  ;;  %v4517_v24 = vld [vmem:[#allocation20 + $0x4f8] sm:$0xf0] }
 0x2cd   :  { %2726 = vmatmul.bf16.vlgmr.msra.gmra.mxu1 %v5300_v36  ;;  %2739 = vmatmul.bf16.vlgmr.msra.gmra.mxu2 %v5294_v43 }
 0x2ce   :  { %2748 = vmatpush.bf16.msra.mxu3 %v3473_v19  ;;  %2761 = vmatpush.bf16.msrb.mxu0 %v3697_v16  ;;  %v3561_v19 = vor.u32 %v4401_v45, %v3558_v39  ;;  %v3785_v16 = vor.u32 %v4457_v40, %v3782_v9  ;;  %v4366_v45 = vld [vmem:[#allocation20 + $0x44] sm:$0xf]  ;;  %v3418_v39 = vld [vmem:[#allocation20 + $0x5c] sm:$0xf0] }
 0x2cf   :  { %2774 = vmatpush.bf16.msrb.mxu1 %v3921_v26  ;;  %2787 = vmatpush.bf16.msrb.mxu2 %v4145_v30  ;;  %v4009_v26 = vor.u32 %v4513_v10, %v4006_v13  ;;  %v4233_v30 = vor.u32 %v4569_v15, %v4230_v18  ;;  %v4422_v40 = vld [vmem:[#allocation20 + $0x204] sm:$0xf]  ;;  %v3642_v9 = vld [vmem:[#allocation20 + $0x21c] sm:$0xf0] }
 0x2d0   :  { %v4478_v10 = vld [vmem:[#allocation20 + $0x3c4] sm:$0xf]  ;;  %v3866_v13 = vld [vmem:[#allocation20 + $0x3dc] sm:$0xf0] }
 0x2d1   :  { %v4534_v15 = vld [vmem:[#allocation20 + $0x584] sm:$0xf]  ;;  %v4090_v18 = vld [vmem:[#allocation20 + $0x59c] sm:$0xf0] }
 0x2d2   :  { %2749 = vmatpush.bf16.msra.mxu3 %v3445_v32  ;;  %2762 = vmatpush.bf16.msrb.mxu0 %v3669_v33  ;;  %v3533_v32 = vor.u32 %v4394_v20, %v3530_v22  ;;  %v3757_v33 = vor.u32 %v4450_v27, %v3754_v21  ;;  %v3645_v20 = vor.u32 %v4422_v40, %v3642_v9  ;;  %v3390_v22 = vld [vmem:[#allocation20 + $0x24] sm:$0xf0]  ;;  %v3732_v40 = vld [vmem:[#allocation20 + $0x2b0] sm:$0xf]  ;;  %v4447_v9 = vld [vmem:[#allocation20 + $0x2c8] sm:$0xf0] }
 0x2d3   :  { %2775 = vmatpush.bf16.msrb.mxu1 %v3893_v0  ;;  %2788 = vmatpush.bf16.msrb.mxu2 %v4117_v41  ;;  %v3981_v0 = vor.u32 %v4506_v28, %v3978_v17  ;;  %v4205_v41 = vor.u32 %v4562_v31, %v4202_v14  ;;  %v3869_v27 = vor.u32 %v4478_v10, %v3866_v13  ;;  %v4471_v28 = vld [vmem:[#allocation20 + $0x38c] sm:$0xf]  ;;  %v3838_v17 = vld [vmem:[#allocation20 + $0x3a4] sm:$0xf0]  ;;  %v3956_v10 = vld [vmem:[#allocation20 + $0x470] sm:$0xf] }
 0x2d4   :  { %v4093_v21 = vor.u32 %v4534_v15, %v4090_v18  ;;  %v4527_v31 = vld [vmem:[#allocation20 + $0x54c] sm:$0xf]  ;;  %v4062_v14 = vld [vmem:[#allocation20 + $0x564] sm:$0xf0]  ;;  %v3841_v49 = vor.u32 %v4471_v28, %v3838_v17  ;;  %v4180_v15 = vld [vmem:[#allocation20 + $0x630] sm:$0xf] }
 0x2d5   :  { %v4065_v12 = vor.u32 %v4527_v31, %v4062_v14  ;;  %v4503_v13 = vld [vmem:[#allocation20 + $0x488] sm:$0xf0]  ;;  %v3928_v28 = vld [vmem:[#allocation20 + $0x438] sm:$0xf]  ;;  %v4496_v17 = vld [vmem:[#allocation20 + $0x450] sm:$0xf0] }
 0x2d6   :  { %2750 = vmatpush.bf16.msra.mxu3 %v3417_v48  ;;  %2763 = vmatpush.bf16.msrb.mxu0 %v3641_v50  ;;  %v3729_v48 = vor.u32 %v4443_v5, %v3726_v42  ;;  %v4380_v50 = vld [vmem:[#allocation20 + $0xb4] sm:$0xf]  ;;  %v4559_v18 = vld [vmem:[#allocation20 + $0x648] sm:$0xf0]  ;;  %v4152_v31 = vld [vmem:[#allocation20 + $0x5f8] sm:$0xf] }
 0x2d7   :  { %2776 = vmatpush.bf16.msrb.mxu1 %v3865_v54  ;;  %2789 = vmatpush.bf16.msrb.mxu2 %v4089_v55  ;;  %v4436_v54 = vld [vmem:[#allocation20 + $0x274] sm:$0xf]  ;;  %v3698_v55 = vld [vmem:[#allocation20 + $0x28c] sm:$0xf0]  ;;  %v3477_v60 = vor.u32 %v4380_v50, %v3474_v23  ;;  %v3564_v50 = vld [vmem:[#allocation20 + $0x160] sm:$0xf] }
 0x2d8   :  { %v3701_v53 = vor.u32 %v4436_v54, %v3698_v55  ;;  %v4524_v42 = vld [vmem:[#allocation20 + $0x530] sm:$0xf0]  ;;  %v4405_v23 = vld [vmem:[#allocation20 + $0x178] sm:$0xf0]  ;;  %v3788_v54 = vld [vmem:[#allocation20 + $0x320] sm:$0xf] }
 0x2d9   :  { %v4461_v55 = vld [vmem:[#allocation20 + $0x338] sm:$0xf0]  ;;  %v4552_v14 = vld [vmem:[#allocation20 + $0x610] sm:$0xf0] }
 0x2da   :  { %2751 = vmatpush.bf16.msra.mxu3 %v3389_v1  ;;  %2764 = vmatpush.bf16.msrb.mxu0 %v3613_v2  ;;  %v4149_v1 = vor.u32 %v4548_v58, %v4146_v59  ;;  %v4429_v2 = vld [vmem:[#allocation20 + $0x23c] sm:$0xf]  ;;  %v4236_v58 = vld [vmem:[#allocation20 + $0x6a0] sm:$0xf] }
 0x2db   :  { %2777 = vmatpush.bf16.msrb.mxu1 %v3837_v6  ;;  %2790 = vmatpush.bf16.msrb.mxu2 %v4061_v57  ;;  %v4541_v6 = vld [vmem:[#allocation20 + $0x5bc] sm:$0xf]  ;;  %v4118_v57 = vld [vmem:[#allocation20 + $0x5d4] sm:$0xf0] }
 0x2dc   :  { %v4573_v59 = vld [vmem:[#allocation20 + $0x6b8] sm:$0xf0] }
 0x2dd   :  { %2752 = vmatmul.bf16.vlgmr.msra.gmra.mxu3 %v5296_v34  ;;  %2765 = vmatmul.bf16.vlgmr.msrb.gmra.mxu0 %v5298_v35 }
 0x2de   :  { %2796 = vmatpush.bf16.msrb.mxu3 %v3589_v25  ;;  %2809 = vmatpush.bf16.msra.mxu0 %v3813_v7  ;;  %v3449_v25 = vor.u32 %v4373_v61, %v3446_v62  ;;  %v3673_v7 = vor.u32 %v4429_v2, %v3670_v3  ;;  %v3536_v61 = vld [vmem:[#allocation20 + $0x128] sm:$0xf]  ;;  %v4398_v62 = vld [vmem:[#allocation20 + $0x140] sm:$0xf0] }
 0x2df   :  { %2822 = vmatpush.bf16.msra.mxu1 %v4037_v11  ;;  %2835 = vmatpush.bf16.msra.mxu2 %v4261_v8  ;;  %v3897_v11 = vor.u32 %v4485_v4, %v3894_v51  ;;  %v4121_v8 = vor.u32 %v4541_v6, %v4118_v57  ;;  %v3760_v2 = vld [vmem:[#allocation20 + $0x2e8] sm:$0xf]  ;;  %v4454_v3 = vld [vmem:[#allocation20 + $0x300] sm:$0xf0] }
 0x2e0   :  { %2778 = vmatmul.bf16.vlgmr.msrb.gmra.mxu1 %v5300_v36  ;;  %2791 = vmatmul.bf16.vlgmr.msrb.gmra.mxu2 %v5294_v43  ;;  %v3984_v4 = vld [vmem:[#allocation20 + $0x4a8] sm:$0xf]  ;;  %v4510_v51 = vld [vmem:[#allocation20 + $0x4c0] sm:$0xf0] }
 0x2e1   :  { %v4208_v6 = vld [vmem:[#allocation20 + $0x668] sm:$0xf]  ;;  %v4566_v57 = vld [vmem:[#allocation20 + $0x680] sm:$0xf0] }
 0x2e2   :  { %2797 = vmatpush.bf16.msrb.mxu3 %v3561_v19  ;;  %2810 = vmatpush.bf16.msra.mxu0 %v3785_v16  ;;  %v4359_v19 = vld [vmem:[#allocation20 + $0xc] sm:$0xf]  ;;  %v3421_v16 = vor.u32 %v4366_v45, %v3418_v39  ;;  %v3508_v45 = vld [vmem:[#allocation20 + $0xf0] sm:$0xf] }
 0x2e3   :  { %2823 = vmatpush.bf16.msra.mxu1 %v4009_v26  ;;  %2836 = vmatpush.bf16.msra.mxu2 %v4233_v30  ;;  %v4415_v26 = vld [vmem:[#allocation20 + $0x1cc] sm:$0xf]  ;;  %v3614_v30 = vld [vmem:[#allocation20 + $0x1e4] sm:$0xf0] }
 0x2e4   :  { %v3617_v5 = vor.u32 %v4415_v26, %v3614_v30  ;;  %v4391_v39 = vld [vmem:[#allocation20 + $0x108] sm:$0xf0]  ;;  %v3957_v26 = vor.u32 %v4503_v13, %v3956_v10  ;;  %v4181_v30 = vor.u32 %v4559_v18, %v4180_v15  ;;  %v4577_v10 = vld [vmem:[#allocation20 + $0x6dc] sm:$0xf]  ;;  %v4266_v13 = vld [vmem:[#allocation20 + $0x6f4] sm:$0xf0] }
 0x2e6   :  { %2798 = vmatpush.bf16.msrb.mxu3 %v3533_v32  ;;  %2811 = vmatpush.bf16.msra.mxu0 %v3757_v33  ;;  %v3592_v32 = vld [vmem:[#allocation20 + $0x198] sm:$0xf]  ;;  %v4412_v33 = vld [vmem:[#allocation20 + $0x1b0] sm:$0xf0] }
 0x2e7   :  { %2824 = vmatpush.bf16.msra.mxu1 %v3981_v0  ;;  %2837 = vmatpush.bf16.msra.mxu2 %v4205_v41  ;;  %v4040_v0 = vld [vmem:[#allocation20 + $0x518] sm:$0xf]  ;;  %v3393_v41 = vor.u32 %v4359_v19, %v3390_v22  ;;  %v3509_v19 = vor.u32 %v4391_v39, %v3508_v45  ;;  %v4384_v22 = vld [vmem:[#allocation20 + $0xd0] sm:$0xf0]  ;;  %v4465_v45 = vld [vmem:[#allocation20 + $0x35c] sm:$0xf] }
 0x2e8   :  { %v3818_v39 = vld [vmem:[#allocation20 + $0x374] sm:$0xf0] }
 0x2ea   :  { %2799 = vmatpush.bf16.msrb.mxu3 %v3505_v46  ;;  %2812 = vmatpush.bf16.msra.mxu0 %v3729_v48  ;;  %v3593_v46 = vor.u32 %v4412_v33, %v3592_v32  ;;  %v3817_v48 = vor.u32 %v4468_v38, %v3816_v37  ;;  %v3452_v37 = vld [vmem:[#allocation20 + $0x80] sm:$0xf]  ;;  %v4377_v38 = vld [vmem:[#allocation20 + $0x98] sm:$0xf0] }
 0x2eb   :  { %2825 = vmatpush.bf16.msra.mxu1 %v3953_v52  ;;  %2838 = vmatpush.bf16.msra.mxu2 %v4177_v29  ;;  %v4041_v52 = vor.u32 %v4524_v42, %v4040_v0  ;;  %v4265_v29 = vor.u32 %v4580_v47, %v4264_v44  ;;  %v3929_v0 = vor.u32 %v4496_v17, %v3928_v28  ;;  %v4433_v42 = vld [vmem:[#allocation20 + $0x258] sm:$0xf0]  ;;  %v3900_v44 = vld [vmem:[#allocation20 + $0x400] sm:$0xf]  ;;  %v4514_v28 = vld [vmem:[#allocation20 + $0x4e4] sm:$0xf] }
 0x2ec   :  { %v4489_v47 = vld [vmem:[#allocation20 + $0x418] sm:$0xf0]  ;;  %v4014_v17 = vld [vmem:[#allocation20 + $0x4fc] sm:$0xf0] }
 0x2ee   :  { %2800 = vmatpush.bf16.msrb.mxu3 %v3477_v60  ;;  %2813 = vmatpush.bf16.msra.mxu0 %v3701_v53  ;;  %v3565_v60 = vor.u32 %v4405_v23, %v3564_v50  ;;  %v3789_v53 = vor.u32 %v4461_v55, %v3788_v54  ;;  %v3424_v50 = vld [vmem:[#allocation20 + $0x48] sm:$0xf]  ;;  %v4370_v23 = vld [vmem:[#allocation20 + $0x60] sm:$0xf0] }
 0x2ef   :  { %2826 = vmatpush.bf16.msra.mxu1 %v3925_v63  ;;  %2839 = vmatpush.bf16.msra.mxu2 %v4149_v1  ;;  %v4013_v63 = vor.u32 %v4517_v24, %v4012_v56  ;;  %v4237_v1 = vor.u32 %v4573_v59, %v4236_v58  ;;  %v3648_v54 = vld [vmem:[#allocation20 + $0x208] sm:$0xf]  ;;  %v4426_v55 = vld [vmem:[#allocation20 + $0x220] sm:$0xf0] }
 0x2f0   :  { %v3872_v56 = vld [vmem:[#allocation20 + $0x3c8] sm:$0xf]  ;;  %v4482_v24 = vld [vmem:[#allocation20 + $0x3e0] sm:$0xf0] }
 0x2f1   :  { %v4096_v58 = vld [vmem:[#allocation20 + $0x588] sm:$0xf]  ;;  %v4538_v59 = vld [vmem:[#allocation20 + $0x5a0] sm:$0xf0] }
 0x2f2   :  { %2801 = vmatpush.bf16.msrb.mxu3 %v3449_v25  ;;  %2814 = vmatpush.bf16.msra.mxu0 %v3673_v7  ;;  %v3537_v25 = vor.u32 %v4398_v62, %v3536_v61  ;;  %v3761_v7 = vor.u32 %v4454_v3, %v3760_v2  ;;  %v3649_v61 = vor.u32 %v4426_v55, %v3648_v54  ;;  %v4363_v62 = vld [vmem:[#allocation20 + $0x28] sm:$0xf0]  ;;  %v4444_v54 = vld [vmem:[#allocation20 + $0x2b4] sm:$0xf]  ;;  %v3734_v55 = vld [vmem:[#allocation20 + $0x2cc] sm:$0xf0] }
 0x2f3   :  { %2827 = vmatpush.bf16.msra.mxu1 %v3897_v11  ;;  %2840 = vmatpush.bf16.msra.mxu2 %v4121_v8  ;;  %v3985_v11 = vor.u32 %v4510_v51, %v3984_v4  ;;  %v4209_v8 = vor.u32 %v4566_v57, %v4208_v6  ;;  %v3873_v2 = vor.u32 %v4482_v24, %v3872_v56  ;;  %v3844_v4 = vld [vmem:[#allocation20 + $0x390] sm:$0xf]  ;;  %v4475_v51 = vld [vmem:[#allocation20 + $0x3a8] sm:$0xf0]  ;;  %v4500_v56 = vld [vmem:[#allocation20 + $0x474] sm:$0xf] }
 0x2f4   :  { %v4097_v3 = vor.u32 %v4538_v59, %v4096_v58  ;;  %v4068_v6 = vld [vmem:[#allocation20 + $0x550] sm:$0xf]  ;;  %v4531_v57 = vld [vmem:[#allocation20 + $0x568] sm:$0xf0]  ;;  %v3845_v15 = vor.u32 %v4475_v51, %v3844_v4  ;;  %v4556_v58 = vld [vmem:[#allocation20 + $0x634] sm:$0xf] }
 0x2f5   :  { %v4069_v18 = vor.u32 %v4531_v57, %v4068_v6  ;;  %v3958_v24 = vld [vmem:[#allocation20 + $0x48c] sm:$0xf0]  ;;  %v4493_v4 = vld [vmem:[#allocation20 + $0x43c] sm:$0xf]  ;;  %v3930_v51 = vld [vmem:[#allocation20 + $0x454] sm:$0xf0] }
 0x2f6   :  { %2802 = vmatpush.bf16.msrb.mxu3 %v3421_v16  ;;  %2815 = vmatpush.bf16.msra.mxu0 %v3645_v20  ;;  %v3733_v16 = vor.u32 %v4447_v9, %v3732_v40  ;;  %v3480_v20 = vld [vmem:[#allocation20 + $0xb8] sm:$0xf]  ;;  %v4182_v59 = vld [vmem:[#allocation20 + $0x64c] sm:$0xf0]  ;;  %v4549_v6 = vld [vmem:[#allocation20 + $0x5fc] sm:$0xf] }
 0x2f7   :  { %2828 = vmatpush.bf16.msra.mxu1 %v3869_v27  ;;  %2841 = vmatpush.bf16.msra.mxu2 %v4093_v21  ;;  %v3704_v27 = vld [vmem:[#allocation20 + $0x278] sm:$0xf]  ;;  %v4440_v21 = vld [vmem:[#allocation20 + $0x290] sm:$0xf0]  ;;  %v3481_v32 = vor.u32 %v4384_v22, %v3480_v20  ;;  %v4402_v20 = vld [vmem:[#allocation20 + $0x164] sm:$0xf] }
 0x2f8   :  { %v3705_v33 = vor.u32 %v4440_v21, %v3704_v27  ;;  %v4042_v9 = vld [vmem:[#allocation20 + $0x534] sm:$0xf0]  ;;  %v3566_v22 = vld [vmem:[#allocation20 + $0x17c] sm:$0xf0]  ;;  %v4458_v27 = vld [vmem:[#allocation20 + $0x324] sm:$0xf] }
 0x2f9   :  { %v3790_v21 = vld [vmem:[#allocation20 + $0x33c] sm:$0xf0]  ;;  %v4154_v57 = vld [vmem:[#allocation20 + $0x614] sm:$0xf0] }
 0x2fa   :  { %2803 = vmatpush.bf16.msrb.mxu3 %v3393_v41  ;;  %2816 = vmatpush.bf16.msra.mxu0 %v3617_v5  ;;  %v4153_v41 = vor.u32 %v4552_v14, %v4152_v31  ;;  %v3676_v5 = vld [vmem:[#allocation20 + $0x240] sm:$0xf]  ;;  %v4570_v31 = vld [vmem:[#allocation20 + $0x6a4] sm:$0xf] }
 0x2fb   :  { %2829 = vmatpush.bf16.msra.mxu1 %v3841_v49  ;;  %2842 = vmatpush.bf16.msra.mxu2 %v4065_v12  ;;  %v4124_v49 = vld [vmem:[#allocation20 + $0x5c0] sm:$0xf]  ;;  %v4545_v12 = vld [vmem:[#allocation20 + $0x5d8] sm:$0xf0] }
 0x2fc   :  { %v4238_v14 = vld [vmem:[#allocation20 + $0x6bc] sm:$0xf0] }
 0x2fd   :  { %2804 = vmatmul.bf16.vlgmr.msrb.gmra.mxu3 %v5296_v34  ;;  %2817 = vmatmul.bf16.vlgmr.msra.gmra.mxu0 %v5298_v35 }
 0x2fe   :  { %2848 = vmatpush.bf16.msra.mxu3 %v3593_v46  ;;  %2861 = vmatpush.bf16.msrb.mxu0 %v3817_v48  ;;  %v3453_v46 = vor.u32 %v4377_v38, %v3452_v37  ;;  %v3677_v48 = vor.u32 %v4433_v42, %v3676_v5  ;;  %v4395_v37 = vld [vmem:[#allocation20 + $0x12c] sm:$0xf]  ;;  %v3538_v38 = vld [vmem:[#allocation20 + $0x144] sm:$0xf0] }
 0x2ff   :  { %2874 = vmatpush.bf16.msrb.mxu1 %v4041_v52  ;;  %2887 = vmatpush.bf16.msrb.mxu2 %v4265_v29  ;;  %v3901_v52 = vor.u32 %v4489_v47, %v3900_v44  ;;  %v4125_v29 = vor.u32 %v4545_v12, %v4124_v49  ;;  %v4451_v5 = vld [vmem:[#allocation20 + $0x2ec] sm:$0xf]  ;;  %v3762_v42 = vld [vmem:[#allocation20 + $0x304] sm:$0xf0] }
 0x300   :  { %2830 = vmatmul.bf16.vlgmr.msra.gmra.mxu1 %v5300_v36  ;;  %2843 = vmatmul.bf16.vlgmr.msra.gmra.mxu2 %v5294_v43  ;;  %v4507_v44 = vld [vmem:[#allocation20 + $0x4ac] sm:$0xf]  ;;  %v3986_v47 = vld [vmem:[#allocation20 + $0x4c4] sm:$0xf0] }
 0x301   :  { %v4563_v49 = vld [vmem:[#allocation20 + $0x66c] sm:$0xf]  ;;  %v4210_v12 = vld [vmem:[#allocation20 + $0x684] sm:$0xf0] }
 0x302   :  { %2849 = vmatpush.bf16.msra.mxu3 %v3565_v60  ;;  %2862 = vmatpush.bf16.msrb.mxu0 %v3789_v53  ;;  %v3396_v60 = vld [vmem:[#allocation20 + $0x10] sm:$0xf]  ;;  %v3425_v53 = vor.u32 %v4370_v23, %v3424_v50  ;;  %v4388_v50 = vld [vmem:[#allocation20 + $0xf4] sm:$0xf] }
 0x303   :  { %2875 = vmatpush.bf16.msrb.mxu1 %v4013_v63  ;;  %2888 = vmatpush.bf16.msrb.mxu2 %v4237_v1  ;;  %v3620_v63 = vld [vmem:[#allocation20 + $0x1d0] sm:$0xf]  ;;  %v4419_v1 = vld [vmem:[#allocation20 + $0x1e8] sm:$0xf0] }
 0x304   :  { %v3621_v40 = vor.u32 %v4419_v1, %v3620_v63  ;;  %v3510_v23 = vld [vmem:[#allocation20 + $0x10c] sm:$0xf0]  ;;  %v3961_v63 = vor.u32 %v4500_v56, %v3958_v24  ;;  %v4185_v1 = vor.u32 %v4556_v58, %v4182_v59  ;;  %v4272_v56 = vld [vmem:[#allocation20 + $0x6e0] sm:$0xf]  ;;  %v4581_v24 = vld [vmem:[#allocation20 + $0x6f8] sm:$0xf0] }
 0x306   :  { %2850 = vmatpush.bf16.msra.mxu3 %v3537_v25  ;;  %2863 = vmatpush.bf16.msrb.mxu0 %v3761_v7  ;;  %v4409_v25 = vld [vmem:[#allocation20 + $0x19c] sm:$0xf]  ;;  %v3594_v7 = vld [vmem:[#allocation20 + $0x1b4] sm:$0xf0] }
 0x307   :  { %2876 = vmatpush.bf16.msrb.mxu1 %v3985_v11  ;;  %2889 = vmatpush.bf16.msrb.mxu2 %v4209_v8  ;;  %v4521_v11 = vld [vmem:[#allocation20 + $0x51c] sm:$0xf]  ;;  %v3397_v8 = vor.u32 %v4363_v62, %v3396_v60  ;;  %v3513_v60 = vor.u32 %v4388_v50, %v3510_v23  ;;  %v3482_v62 = vld [vmem:[#allocation20 + $0xd4] sm:$0xf0]  ;;  %v3824_v50 = vld [vmem:[#allocation20 + $0x360] sm:$0xf] }
 0x308   :  { %v4469_v23 = vld [vmem:[#allocation20 + $0x378] sm:$0xf0] }
 0x30a   :  { %2851 = vmatpush.bf16.msra.mxu3 %v3509_v19  ;;  %2864 = vmatpush.bf16.msrb.mxu0 %v3733_v16  ;;  %v3597_v19 = vor.u32 %v4409_v25, %v3594_v7  ;;  %v3821_v16 = vor.u32 %v4465_v45, %v3818_v39  ;;  %v4374_v45 = vld [vmem:[#allocation20 + $0x84] sm:$0xf]  ;;  %v3454_v39 = vld [vmem:[#allocation20 + $0x9c] sm:$0xf0] }
 0x30b   :  { %2877 = vmatpush.bf16.msrb.mxu1 %v3957_v26  ;;  %2890 = vmatpush.bf16.msrb.mxu2 %v4181_v30  ;;  %v4045_v26 = vor.u32 %v4521_v11, %v4042_v9  ;;  %v4269_v30 = vor.u32 %v4577_v10, %v4266_v13  ;;  %v3933_v11 = vor.u32 %v4493_v4, %v3930_v51  ;;  %v3678_v9 = vld [vmem:[#allocation20 + $0x25c] sm:$0xf0]  ;;  %v4486_v10 = vld [vmem:[#allocation20 + $0x404] sm:$0xf]  ;;  %v4020_v4 = vld [vmem:[#allocation20 + $0x4e8] sm:$0xf] }
 0x30c   :  { %v3902_v13 = vld [vmem:[#allocation20 + $0x41c] sm:$0xf0]  ;;  %v4518_v51 = vld [vmem:[#allocation20 + $0x500] sm:$0xf0] }
 0x30e   :  { %2852 = vmatpush.bf16.msra.mxu3 %v3481_v32  ;;  %2865 = vmatpush.bf16.msrb.mxu0 %v3705_v33  ;;  %v3569_v32 = vor.u32 %v4402_v20, %v3566_v22  ;;  %v3793_v33 = vor.u32 %v4458_v27, %v3790_v21  ;;  %v4367_v20 = vld [vmem:[#allocation20 + $0x4c] sm:$0xf]  ;;  %v3426_v22 = vld [vmem:[#allocation20 + $0x64] sm:$0xf0] }
 0x30f   :  { %2878 = vmatpush.bf16.msrb.mxu1 %v3929_v0  ;;  %2891 = vmatpush.bf16.msrb.mxu2 %v4153_v41  ;;  %v4017_v0 = vor.u32 %v4514_v28, %v4014_v17  ;;  %v4241_v41 = vor.u32 %v4570_v31, %v4238_v14  ;;  %v4423_v27 = vld [vmem:[#allocation20 + $0x20c] sm:$0xf]  ;;  %v3650_v21 = vld [vmem:[#allocation20 + $0x224] sm:$0xf0] }
 0x310   :  { %v4479_v28 = vld [vmem:[#allocation20 + $0x3cc] sm:$0xf]  ;;  %v3874_v17 = vld [vmem:[#allocation20 + $0x3e4] sm:$0xf0] }
 0x311   :  { %v4535_v31 = vld [vmem:[#allocation20 + $0x58c] sm:$0xf]  ;;  %v4098_v14 = vld [vmem:[#allocation20 + $0x5a4] sm:$0xf0] }
 0x312   :  { %2853 = vmatpush.bf16.msra.mxu3 %v3453_v46  ;;  %2866 = vmatpush.bf16.msrb.mxu0 %v3677_v48  ;;  %v3541_v46 = vor.u32 %v4395_v37, %v3538_v38  ;;  %v3765_v48 = vor.u32 %v4451_v5, %v3762_v42  ;;  %v3653_v37 = vor.u32 %v4423_v27, %v3650_v21  ;;  %v3398_v38 = vld [vmem:[#allocation20 + $0x2c] sm:$0xf0]  ;;  %v4392_v27 = vld [vmem:[#allocation20 + $0x110] sm:$0xf0]  ;;  %v3740_v21 = vld [vmem:[#allocation20 + $0x2b8] sm:$0xf] }
 0x313   :  { %2879 = vmatpush.bf16.msrb.mxu1 %v3901_v52  ;;  %2892 = vmatpush.bf16.msrb.mxu2 %v4125_v29  ;;  %v3989_v52 = vor.u32 %v4507_v44, %v3986_v47  ;;  %v4213_v29 = vor.u32 %v4563_v49, %v4210_v12  ;;  %v3877_v5 = vor.u32 %v4479_v28, %v3874_v17  ;;  %v4472_v44 = vld [vmem:[#allocation20 + $0x394] sm:$0xf]  ;;  %v3846_v47 = vld [vmem:[#allocation20 + $0x3ac] sm:$0xf0] }
 0x314   :  { %v4101_v42 = vor.u32 %v4535_v31, %v4098_v14  ;;  %v4528_v49 = vld [vmem:[#allocation20 + $0x554] sm:$0xf]  ;;  %v4070_v12 = vld [vmem:[#allocation20 + $0x56c] sm:$0xf0]  ;;  %v3849_v58 = vor.u32 %v4472_v44, %v3846_v47  ;;  %v3964_v14 = vld [vmem:[#allocation20 + $0x478] sm:$0xf] }
 0x315   :  { %v4073_v59 = vor.u32 %v4528_v49, %v4070_v12  ;;  %v4448_v31 = vld [vmem:[#allocation20 + $0x2d0] sm:$0xf0]  ;;  %v3712_v12 = vld [vmem:[#allocation20 + $0x280] sm:$0xf] }
 0x316   :  { %2854 = vmatpush.bf16.msra.mxu3 %v3425_v53  ;;  %2867 = vmatpush.bf16.msrb.mxu0 %v3649_v61  ;;  %v3737_v53 = vor.u32 %v4444_v54, %v3734_v55  ;;  %v4381_v61 = vld [vmem:[#allocation20 + $0xbc] sm:$0xf] }
 0x317   :  { %2880 = vmatpush.bf16.msrb.mxu1 %v3873_v2  ;;  %2893 = vmatpush.bf16.msrb.mxu2 %v4097_v3  ;;  %v4437_v2 = vld [vmem:[#allocation20 + $0x27c] sm:$0xf]  ;;  %v3706_v3 = vld [vmem:[#allocation20 + $0x294] sm:$0xf0]  ;;  %v3485_v25 = vor.u32 %v4381_v61, %v3482_v62  ;;  %v3572_v61 = vld [vmem:[#allocation20 + $0x168] sm:$0xf] }
 0x318   :  { %v3709_v7 = vor.u32 %v4437_v2, %v3706_v3  ;;  %v4525_v55 = vld [vmem:[#allocation20 + $0x538] sm:$0xf0]  ;;  %v4406_v62 = vld [vmem:[#allocation20 + $0x180] sm:$0xf0]  ;;  %v3796_v2 = vld [vmem:[#allocation20 + $0x328] sm:$0xf] }
 0x319   :  { %v4462_v3 = vld [vmem:[#allocation20 + $0x340] sm:$0xf0] }
 0x31a   :  { %2855 = vmatpush.bf16.msra.mxu3 %v3397_v8  ;;  %2868 = vmatpush.bf16.msrb.mxu0 %v3621_v40  ;;  %v4157_v8 = vor.u32 %v4549_v6, %v4154_v57  ;;  %v4430_v40 = vld [vmem:[#allocation20 + $0x244] sm:$0xf]  ;;  %v4244_v6 = vld [vmem:[#allocation20 + $0x6a8] sm:$0xf] }
 0x31b   :  { %2881 = vmatpush.bf16.msrb.mxu1 %v3845_v15  ;;  %2894 = vmatpush.bf16.msrb.mxu2 %v4069_v18  ;;  %v4542_v15 = vld [vmem:[#allocation20 + $0x5c4] sm:$0xf]  ;;  %v4126_v18 = vld [vmem:[#allocation20 + $0x5dc] sm:$0xf0] }
 0x31c   :  { %v4574_v57 = vld [vmem:[#allocation20 + $0x6c0] sm:$0xf0] }
 0x31d   :  { %2856 = vmatmul.bf16.vlgmr.msra.gmra.mxu3 %v5296_v34  ;;  %2869 = vmatmul.bf16.vlgmr.msrb.gmra.mxu0 %v5298_v35 }
 0x31e   :  { %2900 = vmatpush.bf16.msrb.mxu3 %v3597_v19  ;;  %2913 = vmatpush.bf16.msra.mxu0 %v3821_v16  ;;  %v3457_v19 = vor.u32 %v4374_v45, %v3454_v39  ;;  %v3681_v16 = vor.u32 %v4430_v40, %v3678_v9  ;;  %v3544_v45 = vld [vmem:[#allocation20 + $0x130] sm:$0xf]  ;;  %v4399_v39 = vld [vmem:[#allocation20 + $0x148] sm:$0xf0] }
 0x31f   :  { %2926 = vmatpush.bf16.msra.mxu1 %v4045_v26  ;;  %2939 = vmatpush.bf16.msra.mxu2 %v4269_v30  ;;  %v3905_v26 = vor.u32 %v4486_v10, %v3902_v13  ;;  %v4129_v30 = vor.u32 %v4542_v15, %v4126_v18  ;;  %v3768_v40 = vld [vmem:[#allocation20 + $0x2f0] sm:$0xf]  ;;  %v4455_v9 = vld [vmem:[#allocation20 + $0x308] sm:$0xf0] }
 0x320   :  { %2882 = vmatmul.bf16.vlgmr.msrb.gmra.mxu1 %v5300_v36  ;;  %2895 = vmatmul.bf16.vlgmr.msrb.gmra.mxu2 %v5294_v43  ;;  %v3992_v10 = vld [vmem:[#allocation20 + $0x4b0] sm:$0xf]  ;;  %v4511_v13 = vld [vmem:[#allocation20 + $0x4c8] sm:$0xf0] }
 0x321   :  { %v4216_v15 = vld [vmem:[#allocation20 + $0x670] sm:$0xf]  ;;  %v4567_v18 = vld [vmem:[#allocation20 + $0x688] sm:$0xf0]  ;;  %v3993_v28 = vor.u32 %v4511_v13, %v3992_v10 }
 0x322   :  { %2901 = vmatpush.bf16.msrb.mxu3 %v3569_v32  ;;  %2914 = vmatpush.bf16.msra.mxu0 %v3793_v33  ;;  %v4360_v32 = vld [vmem:[#allocation20 + $0x14] sm:$0xf]  ;;  %v3429_v33 = vor.u32 %v4367_v20, %v3426_v22  ;;  %v3545_v20 = vor.u32 %v4399_v39, %v3544_v45  ;;  %v3769_v22 = vor.u32 %v4455_v9, %v3768_v40  ;;  %v3432_v45 = vld [vmem:[#allocation20 + $0x50] sm:$0xf]  ;;  %v4371_v39 = vld [vmem:[#allocation20 + $0x68] sm:$0xf0] }
 0x323   :  { %2927 = vmatpush.bf16.msra.mxu1 %v4017_v0  ;;  %2940 = vmatpush.bf16.msra.mxu2 %v4241_v41  ;;  %v4416_v0 = vld [vmem:[#allocation20 + $0x1d4] sm:$0xf]  ;;  %v3622_v41 = vld [vmem:[#allocation20 + $0x1ec] sm:$0xf0]  ;;  %v4217_v17 = vor.u32 %v4567_v18, %v4216_v15  ;;  %v4427_v10 = vld [vmem:[#allocation20 + $0x228] sm:$0xf0] }
 0x324   :  { %v3625_v54 = vor.u32 %v4416_v0, %v3622_v41  ;;  %v3741_v41 = vor.u32 %v4448_v31, %v3740_v21  ;;  %v3656_v9 = vld [vmem:[#allocation20 + $0x210] sm:$0xf]  ;;  %v4483_v18 = vld [vmem:[#allocation20 + $0x3e8] sm:$0xf0]  ;;  %v3404_v21 = vld [vmem:[#allocation20 + $0x18] sm:$0xf] }
 0x325   :  { %v3880_v13 = vld [vmem:[#allocation20 + $0x3d0] sm:$0xf] }
 0x326   :  { %2902 = vmatpush.bf16.msrb.mxu3 %v3541_v46  ;;  %2915 = vmatpush.bf16.msra.mxu0 %v3765_v48  ;;  %v3600_v46 = vld [vmem:[#allocation20 + $0x1a0] sm:$0xf]  ;;  %v4413_v48 = vld [vmem:[#allocation20 + $0x1b8] sm:$0xf0]  ;;  %v3881_v31 = vor.u32 %v4483_v18, %v3880_v13 }
 0x327   :  { %2928 = vmatpush.bf16.msra.mxu1 %v3989_v52  ;;  %2941 = vmatpush.bf16.msra.mxu2 %v4213_v29  ;;  %v4048_v52 = vld [vmem:[#allocation20 + $0x520] sm:$0xf]  ;;  %v3401_v29 = vor.u32 %v4360_v32, %v3398_v38  ;;  %v4504_v32 = vld [vmem:[#allocation20 + $0x490] sm:$0xf0] }
 0x328   :  { %v3965_v44 = vor.u32 %v4504_v32, %v3964_v14  ;;  %v4420_v32 = vld [vmem:[#allocation20 + $0x1f0] sm:$0xf0] }
 0x32a   :  { %2903 = vmatpush.bf16.msrb.mxu3 %v3513_v60  ;;  %2916 = vmatpush.bf16.msra.mxu0 %v3737_v53  ;;  %v3601_v60 = vor.u32 %v4413_v48, %v3600_v46  ;;  %v3825_v53 = vor.u32 %v4469_v23, %v3824_v50  ;;  %v4441_v46 = vld [vmem:[#allocation20 + $0x298] sm:$0xf0]  ;;  %v3936_v48 = vld [vmem:[#allocation20 + $0x440] sm:$0xf] }
 0x32b   :  { %2929 = vmatpush.bf16.msra.mxu1 %v3961_v63  ;;  %2942 = vmatpush.bf16.msra.mxu2 %v4185_v1  ;;  %v4049_v63 = vor.u32 %v4525_v55, %v4048_v52  ;;  %v4273_v1 = vor.u32 %v4581_v24, %v4272_v56  ;;  %v4497_v52 = vld [vmem:[#allocation20 + $0x458] sm:$0xf0] }
 0x32e   :  { %2904 = vmatpush.bf16.msrb.mxu3 %v3485_v25  ;;  %2917 = vmatpush.bf16.msra.mxu0 %v3709_v7  ;;  %v3573_v25 = vor.u32 %v4406_v62, %v3572_v61  ;;  %v3797_v7 = vor.u32 %v4462_v3, %v3796_v2  ;;  %v3937_v61 = vor.u32 %v4497_v52, %v3936_v48  ;;  %v3908_v2 = vld [vmem:[#allocation20 + $0x408] sm:$0xf] }
 0x32f   :  { %2930 = vmatpush.bf16.msra.mxu1 %v3933_v11  ;;  %2943 = vmatpush.bf16.msra.mxu2 %v4157_v8  ;;  %v4021_v11 = vor.u32 %v4518_v51, %v4020_v4  ;;  %v4245_v8 = vor.u32 %v4574_v57, %v4244_v6  ;;  %v4490_v4 = vld [vmem:[#allocation20 + $0x420] sm:$0xf0]  ;;  %v4132_v51 = vld [vmem:[#allocation20 + $0x5c8] sm:$0xf] }
 0x330   :  { %v4546_v6 = vld [vmem:[#allocation20 + $0x5e0] sm:$0xf0] }
 0x332   :  { %2905 = vmatpush.bf16.msrb.mxu3 %v3457_v19  ;;  %2918 = vmatpush.bf16.msra.mxu0 %v3681_v16  ;;  %v5329_v16 = vld [vmem:[%s5359_s14] sm:$0xff]  ;;  %s4984_s14 = smov [#allocation22]  }
 0x333   :  { %2931 = vmatpush.bf16.msra.mxu1 %v3905_v26  ;;  %2944 = vmatpush.bf16.msra.mxu2 %v4129_v30  ;;  %v3516_v30 = vld [vmem:[#allocation20 + $0xf8] sm:$0xf]  ;;  %v1474_v38 = vperm.slane %v5329_v16, 0  ;;  %s3023_s26 = sshll.u32 %s4984_s14, 4  ;;  %s3024_s26 = int_to_ptr.vmem [resolvable:$true] %s3023_s26 }
 0x334   :  { %v3517_v0 = vor.u32 %v4392_v27, %v3516_v30  ;;  %v3657_v30 = vor.u32 %v4427_v10, %v3656_v9 }
 0x336   :  { %2906 = vmatpush.bf16.msrb.mxu3 %v3429_v33  ;;  %2919 = vmatpush.bf16.msra.mxu0 %v3653_v37  ;;  %v4188_v33 = vld [vmem:[#allocation20 + $0x638] sm:$0xf]  ;;  %v4560_v37 = vld [vmem:[#allocation20 + $0x650] sm:$0xf0] }
 0x337   :  { %2932 = vmatpush.bf16.msra.mxu1 %v3877_v5  ;;  %2945 = vmatpush.bf16.msra.mxu2 %v4101_v42  ;;  %v3488_v5 = vld [vmem:[#allocation20 + $0xc0] sm:$0xf]  ;;  %v4385_v42 = vld [vmem:[#allocation20 + $0xd8] sm:$0xf0]  ;;  %v4189_v47 = vor.u32 %v4560_v37, %v4188_v33  ;;  %v3852_v33 = vld [vmem:[#allocation20 + $0x398] sm:$0xf] }
 0x338   :  { %v3489_v24 = vor.u32 %v4385_v42, %v3488_v5  ;;  %v4476_v37 = vld [vmem:[#allocation20 + $0x3b0] sm:$0xf0] }
 0x339   :  { %v2662_v19 = vpop.f32.mrf.mxu0 }
 0x33a   :  { %2907 = vmatpush.bf16.msrb.mxu3 %v3401_v29  ;;  %2920 = vmatpush.bf16.msra.mxu0 %v3625_v54  ;;  %v2675_v26 = vpop.f32.mrf.mxu1  ;;  %v4160_v29 = vld [vmem:[#allocation20 + $0x600] sm:$0xf]  ;;  %v4553_v54 = vld [vmem:[#allocation20 + $0x618] sm:$0xf0] }
 0x33b   :  { %2933 = vmatpush.bf16.msra.mxu1 %v3849_v58  ;;  %2946 = vmatpush.bf16.msra.mxu2 %v4073_v59  ;;  %v3713_v58 = vor.u32 %v4441_v46, %v3712_v12  ;;  %v4161_v62 = vor.u32 %v4553_v54, %v4160_v29 }
 0x33d   :  { %2908 = vmatmul.bf16.vlgmr.msrb.gmra.mxu3 %v5296_v34  ;;  %2921 = vmatmul.bf16.vlgmr.msra.gmra.mxu0 %v5298_v35 }
 0x33e   :  { %2952 = vmatpush.bf16.msra.mxu3 %v3601_v60  ;;  %2965 = vmatpush.bf16.msrb.mxu0 %v3825_v53  ;;  %v3460_v60 = vld [vmem:[#allocation20 + $0x88] sm:$0xf]  ;;  %v4378_v53 = vld [vmem:[#allocation20 + $0xa0] sm:$0xf0] }
 0x33f   :  { %2978 = vmatpush.bf16.msrb.mxu1 %v4049_v63  ;;  %2991 = vmatpush.bf16.msrb.mxu2 %v4273_v1  ;;  %v2649_v49 = vpop.f32.mrf.mxu3  ;;  %v3684_v63 = vld [vmem:[#allocation20 + $0x248] sm:$0xf]  ;;  %v4434_v1 = vld [vmem:[#allocation20 + $0x260] sm:$0xf0] }
 0x340   :  { %2934 = vmatmul.bf16.vlgmr.msra.gmra.mxu1 %v5300_v36  ;;  %2947 = vmatmul.bf16.vlgmr.msra.gmra.mxu2 %v5294_v43  ;;  %v2650_v50 = vadd.f32 %v2649_v49, %v1474_v38  ;;  %v2688_v23 = vpop.f32.mrf.mxu2  ;;  %v4076_v38 = vld [vmem:[#allocation20 + $0x558] sm:$0xf] }
 0x341   :  { %v2664_v55 = vpop.f32.mrf.mxu0 }
 0x342   :  { %2953 = vmatpush.bf16.msra.mxu3 %v3573_v25  ;;  %2966 = vmatpush.bf16.msrb.mxu0 %v3797_v7  ;;  %v2663_v56 = vadd.f32 %v2662_v19, %v2650_v50  ;;  %v2677_v59 = vpop.f32.mrf.mxu1  ;;  %v3461_v25 = vor.u32 %v4378_v53, %v3460_v60  ;;  %v3685_v7 = vor.u32 %v4434_v1, %v3684_v63  ;;  %v4104_v19 = vld [vmem:[#allocation20 + $0x590] sm:$0xf]  ;;  %v1476_v60 = vperm.slane %v5329_v16, 2 }
 0x343   :  { %2979 = vmatpush.bf16.msrb.mxu1 %v4021_v11  ;;  %2992 = vmatpush.bf16.msrb.mxu2 %v4245_v8  ;;  %v3909_v11 = vor.u32 %v4490_v4, %v3908_v2  ;;  %v4133_v8 = vor.u32 %v4546_v6, %v4132_v51  ;;  %v1477_v6 = vperm.slane %v5329_v16, 3 }
 0x344   :  { %v2676_v3 = vadd.f32 %v2675_v26, %v2663_v56  ;;  %v3433_v26 = vor.u32 %v4371_v39, %v3432_v45 }
 0x346   :  { %2954 = vmatpush.bf16.msra.mxu3 %v3545_v20  ;;  %2967 = vmatpush.bf16.msrb.mxu0 %v3769_v22  ;;  %v2689_v57 = vadd.f32 %v2688_v23, %v2676_v3  ;;  %v4539_v20 = vld [vmem:[#allocation20 + $0x5a8] sm:$0xf0] }
 0x347   :  { %2980 = vmatpush.bf16.msrb.mxu1 %v3993_v28  ;;  %2993 = vmatpush.bf16.msrb.mxu2 %v4217_v17  ;;  %v2651_v40 = vpop.f32.mrf.mxu3  ;;  %v4364_v28 = vld [vmem:[#allocation20 + $0x30] sm:$0xf0]  ;;  %v3628_v17 = vld [vmem:[#allocation20 + $0x1d8] sm:$0xf]  ;;  %v4105_v14 = vor.u32 %v4539_v20, %v4104_v19  ;;  %v1478_v19 = vperm.slane %v5329_v16, 4 }
 0x348   :  { %4621 = vtanh.f32 %v2689_v57  ;;  %v2690_v15 = vpop.f32.mrf.mxu2  ;;  %v3405_v42 = vor.u32 %v4364_v28, %v3404_v21 }
 0x349   :  { %v2714_v22 = vpop.f32.mrf.mxu0 }
 0x34a   :  { %2955 = vmatpush.bf16.msra.mxu3 %v3517_v0  ;;  %2968 = vmatpush.bf16.msrb.mxu0 %v3741_v41  ;;  %v2727_v27 = vpop.f32.mrf.mxu1  ;;  %v4532_v0 = vld [vmem:[#allocation20 + $0x570] sm:$0xf0]  ;;  %v1475_v41 = vperm.slane %v5329_v16, 1 }
 0x34b   :  { %2981 = vmatpush.bf16.msrb.mxu1 %v3965_v44  ;;  %2994 = vmatpush.bf16.msrb.mxu2 %v4189_v47  ;;  %v3629_v44 = vor.u32 %v4420_v32, %v3628_v17  ;;  %v3853_v47 = vor.u32 %v4476_v37, %v3852_v33  ;;  %v4077_v49 = vor.u32 %v4532_v0, %v4076_v38  ;;  %v1479_v38 = vperm.slane %v5329_v16, 5 }
 0x34e   :  { %2956 = vmatpush.bf16.msra.mxu3 %v3489_v24  ;;  %2969 = vmatpush.bf16.msrb.mxu0 %v3713_v58  ;;  %v4622_v5 = vpop.eup %4621 }
 0x34f   :  { %2982 = vmatpush.bf16.msrb.mxu1 %v3937_v61  ;;  %2995 = vmatpush.bf16.msrb.mxu2 %v4161_v62  ;;  %3011 = vst [vmem:[#allocation22] sm:$0xff] %v4622_v5  ;;  %v2701_v12 = vpop.f32.mrf.mxu3 }
 0x350   :  { %v2702_v46 = vadd.f32 %v2701_v12, %v1475_v41  ;;  %v2740_v48 = vpop.f32.mrf.mxu2 }
 0x351   :  { %v2716_v50 = vpop.f32.mrf.mxu0 }
 0x352   :  { %2957 = vmatpush.bf16.msra.mxu3 %v3461_v25  ;;  %2970 = vmatpush.bf16.msrb.mxu0 %v3685_v7  ;;  %v2715_v23 = vadd.f32 %v2714_v22, %v2702_v46  ;;  %v2729_v52 = vpop.f32.mrf.mxu1 }
 0x353   :  { %2983 = vmatpush.bf16.msrb.mxu1 %v3909_v11  ;;  %2996 = vmatpush.bf16.msrb.mxu2 %v4133_v8 }
 0x354   :  { %v2728_v29 = vadd.f32 %v2727_v27, %v2715_v23 }
 0x356   :  { %2958 = vmatpush.bf16.msra.mxu3 %v3433_v26  ;;  %2971 = vmatpush.bf16.msrb.mxu0 %v3657_v30  ;;  %v2741_v54 = vadd.f32 %v2740_v48, %v2728_v29  ;;  %v1480_v29 = vperm.slane %v5329_v16, 6 }
 0x357   :  { %2984 = vmatpush.bf16.msrb.mxu1 %v3881_v31  ;;  %2997 = vmatpush.bf16.msrb.mxu2 %v4105_v14  ;;  %v2703_v55 = vpop.f32.mrf.mxu3 }
 0x358   :  { %4623 = vtanh.f32 %v2741_v54  ;;  %v2742_v56 = vpop.f32.mrf.mxu2 }
 0x35a   :  { %2959 = vmatpush.bf16.msra.mxu3 %v3405_v42  ;;  %2972 = vmatpush.bf16.msrb.mxu0 %v3629_v44  ;;  %v2766_v24 = vpop.f32.mrf.mxu0 }
 0x35b   :  { %2985 = vmatpush.bf16.msrb.mxu1 %v3853_v47  ;;  %2998 = vmatpush.bf16.msrb.mxu2 %v4077_v49 }
 0x35d   :  { %2960 = vmatmul.bf16.vlgmr.msra.gmra.mxu3 %v5296_v34  ;;  %2973 = vmatmul.bf16.vlgmr.msrb.gmra.mxu0 %v5298_v35  ;;  %v2779_v58 = vpop.f32.mrf.mxu1 }
 0x35e   :  { %2986 = vmatmul.bf16.vlgmr.msrb.gmra.mxu1 %v5300_v36  ;;  %2999 = vmatmul.bf16.vlgmr.msrb.gmra.mxu2 %v5294_v43  ;;  %v4624_v59 = vpop.eup %4623 }
 0x35f   :  { %3012 = vst [vmem:[#allocation22 + $0x8] sm:$0xff] %v4624_v59 }
 0x360   :  { %v2753_v53 = vpop.f32.mrf.mxu3 }
 0x361   :  { %v2754_v61 = vadd.f32 %v2753_v53, %v1476_v60 }
 0x362   :  { %v2768_v34 = vpop.f32.mrf.mxu0 }
 0x363   :  { %v2792_v62 = vpop.f32.mrf.mxu2  ;;  %v2767_v63 = vadd.f32 %v2766_v24, %v2754_v61 }
 0x365   :  { %v2781_v35 = vpop.f32.mrf.mxu1  ;;  %v2780_v1 = vadd.f32 %v2779_v58, %v2767_v63 }
 0x367   :  { %v2793_v2 = vadd.f32 %v2792_v62, %v2780_v1 }
 0x368   :  { %v2755_v36 = vpop.f32.mrf.mxu3 }
 0x369   :  { %4625 = vtanh.f32 %v2793_v2 }
 0x36b   :  { %v2794_v43 = vpop.f32.mrf.mxu2 }
 0x36f   :  { %v4626_v3 = vpop.eup %4625 }
 0x370   :  { %3013 = vst [vmem:[#allocation22 + $0x10] sm:$0xff] %v4626_v3 }
 0x37a   :  { %v2818_v4 = vpop.f32.mrf.mxu0 }
 0x37d   :  { %v2831_v51 = vpop.f32.mrf.mxu1 }
 0x380   :  { %v2805_v57 = vpop.f32.mrf.mxu3 }
 0x381   :  { %v2806_v25 = vadd.f32 %v2805_v57, %v1477_v6 }
 0x382   :  { %v2820_v45 = vpop.f32.mrf.mxu0 }
 0x383   :  { %v2844_v7 = vpop.f32.mrf.mxu2  ;;  %v2819_v39 = vadd.f32 %v2818_v4, %v2806_v25 }
 0x385   :  { %v2833_v11 = vpop.f32.mrf.mxu1  ;;  %v2832_v8 = vadd.f32 %v2831_v51, %v2819_v39 }
 0x387   :  { %v2845_v40 = vadd.f32 %v2844_v7, %v2832_v8 }
 0x388   :  { %v2807_v9 = vpop.f32.mrf.mxu3 }
 0x389   :  { %4627 = vtanh.f32 %v2845_v40 }
 0x38b   :  { %v2846_v10 = vpop.f32.mrf.mxu2 }
 0x38f   :  { %v4628_v13 = vpop.eup %4627 }
 0x390   :  { %3014 = vst [vmem:[#allocation22 + $0x18] sm:$0xff] %v4628_v13 }
 0x39a   :  { %v2870_v15 = vpop.f32.mrf.mxu0 }
 0x39d   :  { %v2883_v18 = vpop.f32.mrf.mxu1 }
 0x3a0   :  { %v2857_v20 = vpop.f32.mrf.mxu3 }
 0x3a1   :  { %v2858_v22 = vadd.f32 %v2857_v20, %v1478_v19 }
 0x3a2   :  { %v2872_v30 = vpop.f32.mrf.mxu0 }
 0x3a3   :  { %v2896_v26 = vpop.f32.mrf.mxu2  ;;  %v2871_v27 = vadd.f32 %v2870_v15, %v2858_v22 }
 0x3a5   :  { %v2885_v21 = vpop.f32.mrf.mxu1  ;;  %v2884_v28 = vadd.f32 %v2883_v18, %v2871_v27 }
 0x3a7   :  { %v2897_v17 = vadd.f32 %v2896_v26, %v2884_v28 }
 0x3a8   :  { %v2859_v31 = vpop.f32.mrf.mxu3 }
 0x3a9   :  { %4629 = vtanh.f32 %v2897_v17 }
 0x3ab   :  { %v2898_v14 = vpop.f32.mrf.mxu2 }
 0x3af   :  { %v4630_v32 = vpop.eup %4629 }
 0x3b0   :  { %3015 = vst [vmem:[#allocation22 + $0x20] sm:$0xff] %v4630_v32 }
 0x3ba   :  { %v2922_v33 = vpop.f32.mrf.mxu0 }
 0x3bd   :  { %v2935_v37 = vpop.f32.mrf.mxu1 }
 0x3c0   :  { %v2909_v0 = vpop.f32.mrf.mxu3 }
 0x3c1   :  { %v2910_v41 = vadd.f32 %v2909_v0, %v1479_v38 }
 0x3c2   :  { %v2924_v42 = vpop.f32.mrf.mxu0 }
 0x3c3   :  { %v2948_v5 = vpop.f32.mrf.mxu2  ;;  %v2923_v44 = vadd.f32 %v2922_v33, %v2910_v41 }
 0x3c5   :  { %v2937_v47 = vpop.f32.mrf.mxu1  ;;  %v2936_v49 = vadd.f32 %v2935_v37, %v2923_v44 }
 0x3c7   :  { %v2949_v12 = vadd.f32 %v2948_v5, %v2936_v49 }
 0x3c8   :  { %v2911_v46 = vpop.f32.mrf.mxu3 }
 0x3c9   :  { %4631 = vtanh.f32 %v2949_v12 }
 0x3cb   :  { %v2950_v48 = vpop.f32.mrf.mxu2 }
 0x3cf   :  { %v4632_v50 = vpop.eup %4631 }
 0x3d0   :  { %3016 = vst [vmem:[#allocation22 + $0x28] sm:$0xff] %v4632_v50 }
 0x3da   :  { %v2974_v23 = vpop.f32.mrf.mxu0 }
 0x3db   :  { %v2987_v52 = vpop.f32.mrf.mxu1 }
 0x3e0   :  { %v2961_v54 = vpop.f32.mrf.mxu3 }
 0x3e1   :  { %v2962_v55 = vadd.f32 %v2961_v54, %v1480_v29  ;;  %v3000_v56 = vpop.f32.mrf.mxu2 }
 0x3e2   :  { %v2976_v24 = vpop.f32.mrf.mxu0 }
 0x3e3   :  { %v2975_v58 = vadd.f32 %v2974_v23, %v2962_v55  ;;  %v2989_v59 = vpop.f32.mrf.mxu1 }
 0x3e5   :  { %v2988_v60 = vadd.f32 %v2987_v52, %v2975_v58 }
 0x3e7   :  { %v3001_v53 = vadd.f32 %v3000_v56, %v2988_v60 }
 0x3e8   :  { %v2963_v61 = vpop.f32.mrf.mxu3 }
 0x3e9   :  { %4633 = vtanh.f32 %v3001_v53  ;;  %v3002_v62 = vpop.f32.mrf.mxu2 }
 0x3ef   :  { %v4634_v16 = vpop.eup %4633 }
 0x3f0   :  { %3017 = vst [vmem:[#allocation22 + $0x30] sm:$0xff] %v4634_v16 }
 0x3f1   :  { %3028 = dma.vmem_to_hbm [thread:$0]  %s3024_s26, 896, %s3026_s5, [#allocation4]  }
 0x3f2   :  { %4961 = dma.done.wait [#allocation4], 896  }
 0x3f3   :  { %4962 = vsyncadd [#allocation4], 4294966400 }
 0x3f4   :  { %3033 = vsyncpa [#allocation3], 1 }
 0x3f5   :  { %3034 = vsyncpa [#allocation6], 1 }
 0x3f6   :  { %3035 = vsyncpa [#allocation9], 1 }
 0x3f7   :  { %3036 = vsyncpa [#allocation12], 1 }
 0x3f8   :  { %3037 = vsyncpa [#allocation15], 1 }
 0x3f9   :  { %3038 = vsyncpa [#allocation18], 1 }
 0x3fa   :  { %3039 = vsyncpa [#allocation21], 1 }
 0x3fb   :  { %3040 = vsyncpa [#allocation4], 1 }

</bundles_post_ra>
